<compile_context>
chip_gen: v7x
topology: tpu7x:2x2x1
jax: 0.10.0
libtpu: 0.0.40
codegen_flags: <defaults>
</compile_context>

<pallas_src>
import functools

import jax
import jax.numpy as jnp
import numpy as np
from jax import lax
from jax.experimental import pallas as pl
from jax.experimental.pallas import tpu as pltpu


MLP_PAD = 128   # lane-padded width of the 64-wide MLP layers
ACT_PAD = 128   # lane-padded width of the action output


# ----------------------------------------------------------------------------
# Pallas kernel: batched input projection + LSTM recurrence + batched MLP head.
# Runs as a single grid invocation.
# ----------------------------------------------------------------------------
def _rppo_kernel(
    obs_ref,    # [T*Bp, D]    time-major, batch-padded observations
    h0_ref,     # [Bp, H]      initial hidden state (padded)
    c0_ref,     # [Bp, H]      initial cell state (padded)
    wih_ref,    # [D, 4H]      LSTM input weights, gate order [i, f, o, g]
    whh_ref,    # [H, 4H]      LSTM recurrent weights, gate order [i, f, o, g]
    b_ref,      # [1, 4H]      b_ih + b_hh, gate order [i, f, o, g]
    w1_ref,     # [H, 128]     MLP layer 1 (lane-padded 64 -> 128)
    b1_ref,     # [1, 128]
    w2_ref,     # [128, 128]   MLP layer 2 (zero-padded rows/cols)
    b2_ref,     # [1, 128]
    wa_ref,     # [128, Ap]    action head (zero-padded rows, lane-padded cols)
    ba_ref,     # [1, Ap]
    act_ref,    # out: [T*Bp, Ap]  tanh(action_means), lane-dense
    hout_ref,   # out: [Bp, H]     final hidden state
    cout_ref,   # out: [Bp, H]     final cell state
    gx_scr,     # scratch VMEM [T*Bp, 4H] f32 (x @ W_ih + b; h_t overlaid on [:, :H])
    *,
    T,          # static: number of timesteps
    unroll,     # static: fori_loop unroll factor
):
    Bp, H = h0_ref.shape

    # ---- Batched input projection for ALL timesteps (one M = T*Bp matmul). ----
    gx_scr[...] = (
        jnp.dot(obs_ref[...], wih_ref[...], preferred_element_type=jnp.float32)
        + b_ref[...]
    )

    # Hoist the loop-invariant recurrent weight load out of the serial loop.
    whh = whh_ref[...]

    # ---- Serial LSTM recurrence: only h @ W_hh + gate math per step. ----------
    def step(t, carry):
        h, c = carry
        row = pl.multiple_of(t * Bp, Bp)           # sublane-aligned (Bp % 8 == 0)
        gates = gx_scr[pl.ds(row, Bp), :] + jnp.dot(
            h, whh, preferred_element_type=jnp.float32
        )                                          # [Bp, 4H]
        # Gate order [i, f, o, g]; sigmoid(x) = 0.5*tanh(0.5*x) + 0.5 so each
        # gate vreg is exactly one EUP push on the serial critical path.
        s = 0.5 * jnp.tanh(0.5 * gates[:, : 3 * H]) + 0.5
        g = jnp.tanh(gates[:, 3 * H:])
        i_g = s[:, :H]
        f_g = s[:, H:2 * H]
        o_g = s[:, 2 * H:3 * H]
        c_new = f_g * c + i_g * g
        h_new = o_g * jnp.tanh(c_new)
        # Overlay h_t onto the now-dead gate slice (no separate hs scratch).
        gx_scr[pl.ds(row, Bp), :H] = h_new
        return h_new, c_new

    h0 = h0_ref[...].astype(jnp.float32)
    c0 = c0_ref[...].astype(jnp.float32)
    h_f, c_f = lax.fori_loop(0, T, step, (h0, c0), unroll=unroll)

    # Final states written exactly once.
    hout_ref[...] = h_f.astype(hout_ref.dtype)
    cout_ref[...] = c_f.astype(cout_ref.dtype)

    # ---- Batched policy MLP + action head over all (t, b) rows at once. ------
    # All intermediates are 128 lanes wide (zero-padded), so no masked lane ops.
    hs = gx_scr[:, :H]                             # [T*Bp, H]
    f1 = jnp.maximum(
        jnp.dot(hs, w1_ref[...], preferred_element_type=jnp.float32) + b1_ref[...],
        0.0,
    )
    f2 = jnp.maximum(
        jnp.dot(f1, w2_ref[...], preferred_element_type=jnp.float32) + b2_ref[...],
        0.0,
    )
    act_ref[...] = jnp.tanh(
        jnp.dot(f2, wa_ref[...], preferred_element_type=jnp.float32) + ba_ref[...]
    ).astype(act_ref.dtype)


# ----------------------------------------------------------------------------
# Wrapper: layout plumbing (padding, gate reorder, lane-dense output) + pallas_call
# ----------------------------------------------------------------------------
def _full_spec(shape):
    nd = len(shape)
    return pl.BlockSpec(shape, lambda i, _nd=nd: (0,) * _nd)


@jax.jit
def recurrent_ppo_forward(params, obs, hidden_states):
    """obs: [B, T, obs_dim]; hidden_states: (h0, c0) each [1, B, H]."""
    h0, c0 = hidden_states
    B, T, D = obs.shape
    H = h0.shape[-1]
    A = params["wa_t"].shape[-1]
    F = params["w1_t"].shape[-1]     # 64-wide MLP hidden

    Bp = ((B + 7) // 8) * 8          # pad batch to a sublane multiple
    Fp = MLP_PAD                     # lane-padded MLP width
    Ap = ACT_PAD                     # lane-dense action output width

    # time-major, batch-padded, flattened to [T*Bp, D]  (row index = t*Bp + b)
    obs_tm = jnp.transpose(obs, (1, 0, 2))                       # [T, B, D]
    obs_tm = jnp.pad(obs_tm, ((0, 0), (0, Bp - B), (0, 0)))      # [T, Bp, D]
    obs_flat = obs_tm.reshape(T * Bp, D)

    h0p = jnp.pad(h0[0], ((0, Bp - B), (0, 0)))                  # [Bp, H]
    c0p = jnp.pad(c0[0], ((0, Bp - B), (0, 0)))                  # [Bp, H]

    # Fuse biases and reorder gates: PyTorch [i, f, g, o] -> kernel [i, f, o, g].
    def reorder(w):
        i_g, f_g, g_g, o_g = jnp.split(w, 4, axis=-1)
        return jnp.concatenate([i_g, f_g, o_g, g_g], axis=-1)

    wih_r = reorder(params["wih_t"])
    whh_r = reorder(params["whh_t"])
    b_r = reorder((params["b_ih"] + params["b_hh"]).reshape(1, 4 * H))

    # Lane-pad the MLP and action head with zeros (numerically a no-op):
    #   w1: [H,64]->[H,128], w2: [64,64]->[128,128], wa: [64,A]->[128,Ap]
    w1_p = jnp.pad(params["w1_t"], ((0, 0), (0, Fp - F)))
    b1_p = jnp.pad(params["b1"], ((0, 0), (0, Fp - F)))
    w2_p = jnp.pad(params["w2_t"], ((0, Fp - F), (0, Fp - F)))
    b2_p = jnp.pad(params["b2"], ((0, 0), (0, Fp - F)))
    wa_p = jnp.pad(params["wa_t"], ((0, Fp - F), (0, Ap - A)))
    ba_p = jnp.pad(params["ba"], ((0, 0), (0, Ap - A)))

    ins = [
        obs_flat, h0p, c0p, wih_r, whh_r, b_r,
        w1_p, b1_p, w2_p, b2_p, wa_p, ba_p,
    ]

    # Explicit VMEM budget: grid=(1,) keeps everything resident at once.
    rows = T * Bp
    f32 = 4
    vmem_need = (
        rows * 4 * H * f32                 # gx_scr (h_t overlaid, no extra scratch)
        + 2 * rows * D * f32               # obs input (double-buffered)
        + 2 * rows * Ap * f32              # act output (double-buffered)
        + 2 * rows * Fp * f32 * 2          # f1 / f2 live intermediates
        + 2 * (D * 4 * H + H * 4 * H + H * Fp + Fp * Fp + Fp * Ap + 6 * 4 * H) * f32
        + (8 << 20)                        # headroom
    )
    vmem_limit = int(min(96 << 20, vmem_need))

    kernel = functools.partial(_rppo_kernel, T=T, unroll=min(T, 8))

    grid_spec = pltpu.PrefetchScalarGridSpec(
        num_scalar_prefetch=0,
        grid=(1,),                                 # single invocation; T handled in-kernel
        in_specs=[_full_spec(x.shape) for x in ins],
        out_specs=[
            pl.BlockSpec((rows, Ap), lambda i: (0, 0)),
            pl.BlockSpec((Bp, H), lambda i: (0, 0)),
            pl.BlockSpec((Bp, H), lambda i: (0, 0)),
        ],
        scratch_shapes=[
            pltpu.VMEM((rows, 4 * H), jnp.float32),   # gx_scr (hs overlaid on [:, :H])
        ],
    )

    act_p, h_out, c_out = pl.pallas_call(
        kernel,
        grid_spec=grid_spec,
        out_shape=(
            jax.ShapeDtypeStruct((rows, Ap), jnp.float32),
            jax.ShapeDtypeStruct((Bp, H), jnp.float32),
            jax.ShapeDtypeStruct((Bp, H), jnp.float32),
        ),
        compiler_params=pltpu.CompilerParams(
            dimension_semantics=("arbitrary",),
            vmem_limit_bytes=vmem_limit,
        ),
    )(*ins)

    # Undo layout plumbing: lane slice, un-pad batch, back to batch_first.
    actions = act_p[:, :A].reshape(T, Bp, A)[:, :B].transpose(1, 0, 2)  # [B, T, A]
    h_new = h_out[:B][None]
    c_new = c_out[:B][None]
    return actions, (h_new, c_new)


# ----------------------------------------------------------------------------
# Pure-JAX reference (mirrors torch.nn.LSTM + Sequential semantics)
# ----------------------------------------------------------------------------
def reference_forward(params, obs, hidden_states):
    h0, c0 = hidden_states
    H = h0.shape[-1]
    wih_t, whh_t = params["wih_t"], params["whh_t"]
    b = params["b_ih"] + params["b_hh"]

    def step(carry, x_t):
        h, c = carry
        gates = x_t @ wih_t + h @ whh_t + b
        i_g = jax.nn.sigmoid(gates[:, 0:H])
        f_g = jax.nn.sigmoid(gates[:, H:2 * H])
        g_g = jnp.tanh(gates[:, 2 * H:3 * H])
        o_g = jax.nn.sigmoid(gates[:, 3 * H:4 * H])
        c_new = f_g * c + i_g * g_g
        h_new = o_g * jnp.tanh(c_new)
        return (h_new, c_new), h_new

    obs_tm = jnp.transpose(obs, (1, 0, 2))
    (h_f, c_f), hs = lax.scan(step, (h0[0], c0[0]), obs_tm)
    lstm_out = jnp.transpose(hs, (1, 0, 2))            # [B, T, H]

    f1 = jnp.maximum(lstm_out @ params["w1_t"] + params["b1"], 0.0)
    f2 = jnp.maximum(f1 @ params["w2_t"] + params["b2"], 0.0)
    actions = jnp.tanh(f2 @ params["wa_t"] + params["ba"])
    return actions, (h_f[None], c_f[None])


# ----------------------------------------------------------------------------
# Deterministic parameter init (PyTorch LSTM/Linear-style uniform bounds)
# ----------------------------------------------------------------------------
def init_params(key, obs_dim, action_dim, H):
    ks = jax.random.split(key, 10)
    u = lambda k, shape, bound: jax.random.uniform(
        k, shape, jnp.float32, minval=-bound, maxval=bound
    )
    s_lstm = 1.0 / np.sqrt(H)
    return {
        # LSTM (stored pre-transposed: [in, 4H], PyTorch gate order i,f,g,o)
        "wih_t": u(ks[0], (obs_dim, 4 * H), s_lstm),
        "whh_t": u(ks[1], (H, 4 * H), s_lstm),
        "b_ih": u(ks[2], (4 * H,), s_lstm),
        "b_hh": u(ks[3], (4 * H,), s_lstm),
        # MLP extractor
        "w1_t": u(ks[4], (H, 64), 1.0 / np.sqrt(H)),
        "b1": u(ks[5], (1, 64), 1.0 / np.sqrt(H)),
        "w2_t": u(ks[6], (64, 64), 1.0 / np.sqrt(64)),
        "b2": u(ks[7], (1, 64), 1.0 / np.sqrt(64)),
        # action head
        "wa_t": u(ks[8], (64, action_dim), 1.0 / np.sqrt(64)),
        "ba": u(ks[9], (1, action_dim), 1.0 / np.sqrt(64)),
        # log_std exists as a parameter but is unused in forward()
        "log_std": jnp.zeros((action_dim,), jnp.float32),
    }


if __name__ == "__main__":
    B, T, OBS_DIM, ACTION_DIM, H = 4, 8, 13, 2, 128

    key = jax.random.PRNGKey(0)
    k_p, k_obs, k_h, k_c = jax.random.split(key, 4)

    params = init_params(k_p, OBS_DIM, ACTION_DIM, H)
    obs = jax.random.normal(k_obs, (B, T, OBS_DIM), jnp.float32)
    h0 = jax.random.normal(k_h, (1, B, H), jnp.float32) * 0.1
    c0 = jax.random.normal(k_c, (1, B, H), jnp.float32) * 0.1

    actions, (h_new, c_new) = recurrent_ppo_forward(params, obs, (h0, c0))
    jax.block_until_ready((actions, h_new, c_new))

    ref_actions, (ref_h, ref_c) = reference_forward(params, obs, (h0, c0))

    assert actions.shape == (B, T, ACTION_DIM)
    assert h_new.shape == (1, B, H) and c_new.shape == (1, B, H)
    # atol slightly above 1e-5: the in-kernel sigmoid uses the exact tanh
    # identity 0.5*tanh(x/2)+0.5, which differs from exp-based sigmoid only at
    # f32 rounding level.
    np.testing.assert_allclose(np.asarray(actions), np.asarray(ref_actions),
                               rtol=1e-5, atol=2e-5)
    np.testing.assert_allclose(np.asarray(h_new), np.asarray(ref_h),
                               rtol=1e-5, atol=2e-5)
    np.testing.assert_allclose(np.asarray(c_new), np.asarray(ref_c),
                               rtol=1e-5, atol=2e-5)

    print("KERNEL_OK")
</pallas_src>

<mosaic_0001>
module attributes {stable_mosaic.version = 11 : i64} {
  func.func @_rppo_kernel(%arg0: i32, %arg1: memref<64x13xf32, #tpu.memory_space<vmem>>, %arg2: memref<8x128xf32, #tpu.memory_space<vmem>>, %arg3: memref<8x128xf32, #tpu.memory_space<vmem>>, %arg4: memref<13x512xf32, #tpu.memory_space<vmem>>, %arg5: memref<128x512xf32, #tpu.memory_space<vmem>>, %arg6: memref<1x512xf32, #tpu.memory_space<vmem>>, %arg7: memref<128x128xf32, #tpu.memory_space<vmem>>, %arg8: memref<1x128xf32, #tpu.memory_space<vmem>>, %arg9: memref<128x128xf32, #tpu.memory_space<vmem>>, %arg10: memref<1x128xf32, #tpu.memory_space<vmem>>, %arg11: memref<128x128xf32, #tpu.memory_space<vmem>>, %arg12: memref<1x128xf32, #tpu.memory_space<vmem>>, %arg13: memref<64x128xf32, #tpu.memory_space<vmem>>, %arg14: memref<8x128xf32, #tpu.memory_space<vmem>>, %arg15: memref<8x128xf32, #tpu.memory_space<vmem>>, %arg16: memref<64x512xf32, #tpu.memory_space<vmem>>) attributes {dimension_semantics = [#tpu.dimension_semantics<arbitrary>], iteration_bounds = array<i64: 1>, scalar_prefetch = 0 : i64, scratch_operands = 1 : i64, tpu.core_type = #tpu.core_type<tc>, window_params = [{pipeline_mode = #tpu.pipeline_mode<synchronous>, transform_indices = @transform_0, window_bounds = array<i64: 64, 13>}, {pipeline_mode = #tpu.pipeline_mode<synchronous>, transform_indices = @transform_1, window_bounds = array<i64: 8, 128>}, {pipeline_mode = #tpu.pipeline_mode<synchronous>, transform_indices = @transform_2, window_bounds = array<i64: 8, 128>}, {pipeline_mode = #tpu.pipeline_mode<synchronous>, transform_indices = @transform_3, window_bounds = array<i64: 13, 512>}, {pipeline_mode = #tpu.pipeline_mode<synchronous>, transform_indices = @transform_4, window_bounds = array<i64: 128, 512>}, {pipeline_mode = #tpu.pipeline_mode<synchronous>, transform_indices = @transform_5, window_bounds = array<i64: 1, 512>}, {pipeline_mode = #tpu.pipeline_mode<synchronous>, transform_indices = @transform_6, window_bounds = array<i64: 128, 128>}, {pipeline_mode = #tpu.pipeline_mode<synchronous>, transform_indices = @transform_7, window_bounds = array<i64: 1, 128>}, {pipeline_mode = #tpu.pipeline_mode<synchronous>, transform_indices = @transform_8, window_bounds = array<i64: 128, 128>}, {pipeline_mode = #tpu.pipeline_mode<synchronous>, transform_indices = @transform_9, window_bounds = array<i64: 1, 128>}, {pipeline_mode = #tpu.pipeline_mode<synchronous>, transform_indices = @transform_10, window_bounds = array<i64: 128, 128>}, {pipeline_mode = #tpu.pipeline_mode<synchronous>, transform_indices = @transform_11, window_bounds = array<i64: 1, 128>}, {pipeline_mode = #tpu.pipeline_mode<synchronous>, transform_indices = @transform_12, window_bounds = array<i64: 64, 128>}, {pipeline_mode = #tpu.pipeline_mode<synchronous>, transform_indices = @transform_13, window_bounds = array<i64: 8, 128>}, {pipeline_mode = #tpu.pipeline_mode<synchronous>, transform_indices = @transform_14, window_bounds = array<i64: 8, 128>}]} {
    %c0 = arith.constant 0 : index
    %c0_0 = arith.constant 0 : index
    %0 = vector.load %arg1[%c0, %c0_0] : memref<64x13xf32, #tpu.memory_space<vmem>>, vector<64x13xf32>
    %c0_1 = arith.constant 0 : index
    %c0_2 = arith.constant 0 : index
    %1 = vector.load %arg4[%c0_1, %c0_2] : memref<13x512xf32, #tpu.memory_space<vmem>>, vector<13x512xf32>
    %cst = arith.constant dense<0.000000e+00> : vector<64x512xf32>
    %2 = tpu.matmul %0, %1, %cst {dimension_numbers = #tpu.dot_dimension_numbers<[1], [0], [0], [1], [0, 0, 1, 1], [], []>} : vector<64x13xf32>, vector<13x512xf32>, vector<64x512xf32> -> vector<64x512xf32>
    %c0_3 = arith.constant 0 : index
    %c0_4 = arith.constant 0 : index
    %3 = vector.load %arg6[%c0_3, %c0_4] : memref<1x512xf32, #tpu.memory_space<vmem>>, vector<1x512xf32>
    %4 = vector.broadcast %3 : vector<1x512xf32> to vector<64x512xf32>
    %5 = arith.addf %2, %4 : vector<64x512xf32>
    %c0_5 = arith.constant 0 : index
    %c0_6 = arith.constant 0 : index
    %6 = vector.load %arg16[%c0_5, %c0_6] : memref<64x512xf32, #tpu.memory_space<vmem>>, vector<64x512xf32>
    tpu.vector_store %arg16[%c0_5, %c0_6], %5 {strides = array<i32>} : memref<64x512xf32, #tpu.memory_space<vmem>>, vector<64x512xf32>,
    %c0_7 = arith.constant 0 : index
    %c0_8 = arith.constant 0 : index
    %7 = vector.load %arg5[%c0_7, %c0_8] : memref<128x512xf32, #tpu.memory_space<vmem>>, vector<128x512xf32>
    %c0_9 = arith.constant 0 : index
    %c0_10 = arith.constant 0 : index
    %8 = vector.load %arg2[%c0_9, %c0_10] : memref<8x128xf32, #tpu.memory_space<vmem>>, vector<8x128xf32>
    %c0_11 = arith.constant 0 : index
    %c0_12 = arith.constant 0 : index
    %9 = vector.load %arg3[%c0_11, %c0_12] : memref<8x128xf32, #tpu.memory_space<vmem>>, vector<8x128xf32>
    %c0_i32 = arith.constant 0 : i32
    %c8_i32 = arith.constant 8 : i32
    %10 = arith.muli %c0_i32, %c8_i32 : i32
    %11 = tpu.assume_multiple %10, 8 : i32
    %12 = arith.index_cast %11 : i32 to index
    %c0_13 = arith.constant 0 : index
    %13 = vector.load %arg16[%12, %c0_13] : memref<64x512xf32, #tpu.memory_space<vmem>>, vector<8x512xf32>
    %cst_14 = arith.constant dense<0.000000e+00> : vector<8x512xf32>
    %14 = tpu.matmul %8, %7, %cst_14 {dimension_numbers = #tpu.dot_dimension_numbers<[1], [0], [0], [1], [0, 0, 1, 1], [], []>} : vector<8x128xf32>, vector<128x512xf32>, vector<8x512xf32> -> vector<8x512xf32>
    %15 = arith.addf %13, %14 : vector<8x512xf32>
    %16 = vector.extract_strided_slice %15 {offsets = [0, 0], sizes = [8, 384], strides = [1, 1]} : vector<8x512xf32> to vector<8x384xf32>
    %cst_15 = arith.constant 5.000000e-01 : f32
    %17 = vector.broadcast %cst_15 : f32 to vector<8x384xf32>
    %18 = arith.mulf %17, %16 : vector<8x384xf32>
    %19 = math.tanh %18 : vector<8x384xf32>
    %cst_16 = arith.constant 5.000000e-01 : f32
    %20 = vector.broadcast %cst_16 : f32 to vector<8x384xf32>
    %21 = arith.mulf %20, %19 : vector<8x384xf32>
    %cst_17 = arith.constant 5.000000e-01 : f32
    %22 = vector.broadcast %cst_17 : f32 to vector<8x384xf32>
    %23 = arith.addf %21, %22 : vector<8x384xf32>
    %24 = vector.extract_strided_slice %15 {offsets = [0, 384], sizes = [8, 128], strides = [1, 1]} : vector<8x512xf32> to vector<8x128xf32>
    %25 = math.tanh %24 : vector<8x128xf32>
    %26 = vector.extract_strided_slice %23 {offsets = [0, 0], sizes = [8, 128], strides = [1, 1]} : vector<8x384xf32> to vector<8x128xf32>
    %27 = vector.extract_strided_slice %23 {offsets = [0, 128], sizes = [8, 128], strides = [1, 1]} : vector<8x384xf32> to vector<8x128xf32>
    %28 = vector.extract_strided_slice %23 {offsets = [0, 256], sizes = [8, 128], strides = [1, 1]} : vector<8x384xf32> to vector<8x128xf32>
    %29 = arith.mulf %27, %9 : vector<8x128xf32>
    %30 = arith.mulf %26, %25 : vector<8x128xf32>
    %31 = arith.addf %29, %30 : vector<8x128xf32>
    %32 = math.tanh %31 : vector<8x128xf32>
    %33 = arith.mulf %28, %32 : vector<8x128xf32>
    %34 = arith.index_cast %11 : i32 to index
    %c0_18 = arith.constant 0 : index
    %35 = vector.load %arg16[%34, %c0_18] : memref<64x512xf32, #tpu.memory_space<vmem>>, vector<8x128xf32>
    tpu.vector_store %arg16[%34, %c0_18], %33 {strides = array<i32>} : memref<64x512xf32, #tpu.memory_space<vmem>>, vector<8x128xf32>,
    %c1_i32 = arith.constant 1 : i32
    %c8_i32_19 = arith.constant 8 : i32
    %36 = arith.muli %c1_i32, %c8_i32_19 : i32
    %37 = tpu.assume_multiple %36, 8 : i32
    %38 = arith.index_cast %37 : i32 to index
    %c0_20 = arith.constant 0 : index
    %39 = vector.load %arg16[%38, %c0_20] : memref<64x512xf32, #tpu.memory_space<vmem>>, vector<8x512xf32>
    %cst_21 = arith.constant dense<0.000000e+00> : vector<8x512xf32>
    %40 = tpu.matmul %33, %7, %cst_21 {dimension_numbers = #tpu.dot_dimension_numbers<[1], [0], [0], [1], [0, 0, 1, 1], [], []>} : vector<8x128xf32>, vector<128x512xf32>, vector<8x512xf32> -> vector<8x512xf32>
    %41 = arith.addf %39, %40 : vector<8x512xf32>
    %42 = vector.extract_strided_slice %41 {offsets = [0, 0], sizes = [8, 384], strides = [1, 1]} : vector<8x512xf32> to vector<8x384xf32>
    %cst_22 = arith.constant 5.000000e-01 : f32
    %43 = vector.broadcast %cst_22 : f32 to vector<8x384xf32>
    %44 = arith.mulf %43, %42 : vector<8x384xf32>
    %45 = math.tanh %44 : vector<8x384xf32>
    %cst_23 = arith.constant 5.000000e-01 : f32
    %46 = vector.broadcast %cst_23 : f32 to vector<8x384xf32>
    %47 = arith.mulf %46, %45 : vector<8x384xf32>
    %cst_24 = arith.constant 5.000000e-01 : f32
    %48 = vector.broadcast %cst_24 : f32 to vector<8x384xf32>
    %49 = arith.addf %47, %48 : vector<8x384xf32>
    %50 = vector.extract_strided_slice %41 {offsets = [0, 384], sizes = [8, 128], strides = [1, 1]} : vector<8x512xf32> to vector<8x128xf32>
    %51 = math.tanh %50 : vector<8x128xf32>
    %52 = vector.extract_strided_slice %49 {offsets = [0, 0], sizes = [8, 128], strides = [1, 1]} : vector<8x384xf32> to vector<8x128xf32>
    %53 = vector.extract_strided_slice %49 {offsets = [0, 128], sizes = [8, 128], strides = [1, 1]} : vector<8x384xf32> to vector<8x128xf32>
    %54 = vector.extract_strided_slice %49 {offsets = [0, 256], sizes = [8, 128], strides = [1, 1]} : vector<8x384xf32> to vector<8x128xf32>
    %55 = arith.mulf %53, %31 : vector<8x128xf32>
    %56 = arith.mulf %52, %51 : vector<8x128xf32>
    %57 = arith.addf %55, %56 : vector<8x128xf32>
    %58 = math.tanh %57 : vector<8x128xf32>
    %59 = arith.mulf %54, %58 : vector<8x128xf32>
    %60 = arith.index_cast %37 : i32 to index
    %c0_25 = arith.constant 0 : index
    %61 = vector.load %arg16[%60, %c0_25] : memref<64x512xf32, #tpu.memory_space<vmem>>, vector<8x128xf32>
    tpu.vector_store %arg16[%60, %c0_25], %59 {strides = array<i32>} : memref<64x512xf32, #tpu.memory_space<vmem>>, vector<8x128xf32>,
    %c2_i32 = arith.constant 2 : i32
    %c8_i32_26 = arith.constant 8 : i32
    %62 = arith.muli %c2_i32, %c8_i32_26 : i32
    %63 = tpu.assume_multiple %62, 8 : i32
    %64 = arith.index_cast %63 : i32 to index
    %c0_27 = arith.constant 0 : index
    %65 = vector.load %arg16[%64, %c0_27] : memref<64x512xf32, #tpu.memory_space<vmem>>, vector<8x512xf32>
    %cst_28 = arith.constant dense<0.000000e+00> : vector<8x512xf32>
    %66 = tpu.matmul %59, %7, %cst_28 {dimension_numbers = #tpu.dot_dimension_numbers<[1], [0], [0], [1], [0, 0, 1, 1], [], []>} : vector<8x128xf32>, vector<128x512xf32>, vector<8x512xf32> -> vector<8x512xf32>
    %67 = arith.addf %65, %66 : vector<8x512xf32>
    %68 = vector.extract_strided_slice %67 {offsets = [0, 0], sizes = [8, 384], strides = [1, 1]} : vector<8x512xf32> to vector<8x384xf32>
    %cst_29 = arith.constant 5.000000e-01 : f32
    %69 = vector.broadcast %cst_29 : f32 to vector<8x384xf32>
    %70 = arith.mulf %69, %68 : vector<8x384xf32>
    %71 = math.tanh %70 : vector<8x384xf32>
    %cst_30 = arith.constant 5.000000e-01 : f32
    %72 = vector.broadcast %cst_30 : f32 to vector<8x384xf32>
    %73 = arith.mulf %72, %71 : vector<8x384xf32>
    %cst_31 = arith.constant 5.000000e-01 : f32
    %74 = vector.broadcast %cst_31 : f32 to vector<8x384xf32>
    %75 = arith.addf %73, %74 : vector<8x384xf32>
    %76 = vector.extract_strided_slice %67 {offsets = [0, 384], sizes = [8, 128], strides = [1, 1]} : vector<8x512xf32> to vector<8x128xf32>
    %77 = math.tanh %76 : vector<8x128xf32>
    %78 = vector.extract_strided_slice %75 {offsets = [0, 0], sizes = [8, 128], strides = [1, 1]} : vector<8x384xf32> to vector<8x128xf32>
    %79 = vector.extract_strided_slice %75 {offsets = [0, 128], sizes = [8, 128], strides = [1, 1]} : vector<8x384xf32> to vector<8x128xf32>
    %80 = vector.extract_strided_slice %75 {offsets = [0, 256], sizes = [8, 128], strides = [1, 1]} : vector<8x384xf32> to vector<8x128xf32>
    %81 = arith.mulf %79, %57 : vector<8x128xf32>
    %82 = arith.mulf %78, %77 : vector<8x128xf32>
    %83 = arith.addf %81, %82 : vector<8x128xf32>
    %84 = math.tanh %83 : vector<8x128xf32>
    %85 = arith.mulf %80, %84 : vector<8x128xf32>
    %86 = arith.index_cast %63 : i32 to index
    %c0_32 = arith.constant 0 : index
    %87 = vector.load %arg16[%86, %c0_32] : memref<64x512xf32, #tpu.memory_space<vmem>>, vector<8x128xf32>
    tpu.vector_store %arg16[%86, %c0_32], %85 {strides = array<i32>} : memref<64x512xf32, #tpu.memory_space<vmem>>, vector<8x128xf32>,
    %c3_i32 = arith.constant 3 : i32
    %c8_i32_33 = arith.constant 8 : i32
    %88 = arith.muli %c3_i32, %c8_i32_33 : i32
    %89 = tpu.assume_multiple %88, 8 : i32
    %90 = arith.index_cast %89 : i32 to index
    %c0_34 = arith.constant 0 : index
    %91 = vector.load %arg16[%90, %c0_34] : memref<64x512xf32, #tpu.memory_space<vmem>>, vector<8x512xf32>
    %cst_35 = arith.constant dense<0.000000e+00> : vector<8x512xf32>
    %92 = tpu.matmul %85, %7, %cst_35 {dimension_numbers = #tpu.dot_dimension_numbers<[1], [0], [0], [1], [0, 0, 1, 1], [], []>} : vector<8x128xf32>, vector<128x512xf32>, vector<8x512xf32> -> vector<8x512xf32>
    %93 = arith.addf %91, %92 : vector<8x512xf32>
    %94 = vector.extract_strided_slice %93 {offsets = [0, 0], sizes = [8, 384], strides = [1, 1]} : vector<8x512xf32> to vector<8x384xf32>
    %cst_36 = arith.constant 5.000000e-01 : f32
    %95 = vector.broadcast %cst_36 : f32 to vector<8x384xf32>
    %96 = arith.mulf %95, %94 : vector<8x384xf32>
    %97 = math.tanh %96 : vector<8x384xf32>
    %cst_37 = arith.constant 5.000000e-01 : f32
    %98 = vector.broadcast %cst_37 : f32 to vector<8x384xf32>
    %99 = arith.mulf %98, %97 : vector<8x384xf32>
    %cst_38 = arith.constant 5.000000e-01 : f32
    %100 = vector.broadcast %cst_38 : f32 to vector<8x384xf32>
    %101 = arith.addf %99, %100 : vector<8x384xf32>
    %102 = vector.extract_strided_slice %93 {offsets = [0, 384], sizes = [8, 128], strides = [1, 1]} : vector<8x512xf32> to vector<8x128xf32>
    %103 = math.tanh %102 : vector<8x128xf32>
    %104 = vector.extract_strided_slice %101 {offsets = [0, 0], sizes = [8, 128], strides = [1, 1]} : vector<8x384xf32> to vector<8x128xf32>
    %105 = vector.extract_strided_slice %101 {offsets = [0, 128], sizes = [8, 128], strides = [1, 1]} : vector<8x384xf32> to vector<8x128xf32>
    %106 = vector.extract_strided_slice %101 {offsets = [0, 256], sizes = [8, 128], strides = [1, 1]} : vector<8x384xf32> to vector<8x128xf32>
    %107 = arith.mulf %105, %83 : vector<8x128xf32>
    %108 = arith.mulf %104, %103 : vector<8x128xf32>
    %109 = arith.addf %107, %108 : vector<8x128xf32>
    %110 = math.tanh %109 : vector<8x128xf32>
    %111 = arith.mulf %106, %110 : vector<8x128xf32>
    %112 = arith.index_cast %89 : i32 to index
    %c0_39 = arith.constant 0 : index
    %113 = vector.load %arg16[%112, %c0_39] : memref<64x512xf32, #tpu.memory_space<vmem>>, vector<8x128xf32>
    tpu.vector_store %arg16[%112, %c0_39], %111 {strides = array<i32>} : memref<64x512xf32, #tpu.memory_space<vmem>>, vector<8x128xf32>,
    %c4_i32 = arith.constant 4 : i32
    %c8_i32_40 = arith.constant 8 : i32
    %114 = arith.muli %c4_i32, %c8_i32_40 : i32
    %115 = tpu.assume_multiple %114, 8 : i32
    %116 = arith.index_cast %115 : i32 to index
    %c0_41 = arith.constant 0 : index
    %117 = vector.load %arg16[%116, %c0_41] : memref<64x512xf32, #tpu.memory_space<vmem>>, vector<8x512xf32>
    %cst_42 = arith.constant dense<0.000000e+00> : vector<8x512xf32>
    %118 = tpu.matmul %111, %7, %cst_42 {dimension_numbers = #tpu.dot_dimension_numbers<[1], [0], [0], [1], [0, 0, 1, 1], [], []>} : vector<8x128xf32>, vector<128x512xf32>, vector<8x512xf32> -> vector<8x512xf32>
    %119 = arith.addf %117, %118 : vector<8x512xf32>
    %120 = vector.extract_strided_slice %119 {offsets = [0, 0], sizes = [8, 384], strides = [1, 1]} : vector<8x512xf32> to vector<8x384xf32>
    %cst_43 = arith.constant 5.000000e-01 : f32
    %121 = vector.broadcast %cst_43 : f32 to vector<8x384xf32>
    %122 = arith.mulf %121, %120 : vector<8x384xf32>
    %123 = math.tanh %122 : vector<8x384xf32>
    %cst_44 = arith.constant 5.000000e-01 : f32
    %124 = vector.broadcast %cst_44 : f32 to vector<8x384xf32>
    %125 = arith.mulf %124, %123 : vector<8x384xf32>
    %cst_45 = arith.constant 5.000000e-01 : f32
    %126 = vector.broadcast %cst_45 : f32 to vector<8x384xf32>
    %127 = arith.addf %125, %126 : vector<8x384xf32>
    %128 = vector.extract_strided_slice %119 {offsets = [0, 384], sizes = [8, 128], strides = [1, 1]} : vector<8x512xf32> to vector<8x128xf32>
    %129 = math.tanh %128 : vector<8x128xf32>
    %130 = vector.extract_strided_slice %127 {offsets = [0, 0], sizes = [8, 128], strides = [1, 1]} : vector<8x384xf32> to vector<8x128xf32>
    %131 = vector.extract_strided_slice %127 {offsets = [0, 128], sizes = [8, 128], strides = [1, 1]} : vector<8x384xf32> to vector<8x128xf32>
    %132 = vector.extract_strided_slice %127 {offsets = [0, 256], sizes = [8, 128], strides = [1, 1]} : vector<8x384xf32> to vector<8x128xf32>
    %133 = arith.mulf %131, %109 : vector<8x128xf32>
    %134 = arith.mulf %130, %129 : vector<8x128xf32>
    %135 = arith.addf %133, %134 : vector<8x128xf32>
    %136 = math.tanh %135 : vector<8x128xf32>
    %137 = arith.mulf %132, %136 : vector<8x128xf32>
    %138 = arith.index_cast %115 : i32 to index
    %c0_46 = arith.constant 0 : index
    %139 = vector.load %arg16[%138, %c0_46] : memref<64x512xf32, #tpu.memory_space<vmem>>, vector<8x128xf32>
    tpu.vector_store %arg16[%138, %c0_46], %137 {strides = array<i32>} : memref<64x512xf32, #tpu.memory_space<vmem>>, vector<8x128xf32>,
    %c5_i32 = arith.constant 5 : i32
    %c8_i32_47 = arith.constant 8 : i32
    %140 = arith.muli %c5_i32, %c8_i32_47 : i32
    %141 = tpu.assume_multiple %140, 8 : i32
    %142 = arith.index_cast %141 : i32 to index
    %c0_48 = arith.constant 0 : index
    %143 = vector.load %arg16[%142, %c0_48] : memref<64x512xf32, #tpu.memory_space<vmem>>, vector<8x512xf32>
    %cst_49 = arith.constant dense<0.000000e+00> : vector<8x512xf32>
    %144 = tpu.matmul %137, %7, %cst_49 {dimension_numbers = #tpu.dot_dimension_numbers<[1], [0], [0], [1], [0, 0, 1, 1], [], []>} : vector<8x128xf32>, vector<128x512xf32>, vector<8x512xf32> -> vector<8x512xf32>
    %145 = arith.addf %143, %144 : vector<8x512xf32>
    %146 = vector.extract_strided_slice %145 {offsets = [0, 0], sizes = [8, 384], strides = [1, 1]} : vector<8x512xf32> to vector<8x384xf32>
    %cst_50 = arith.constant 5.000000e-01 : f32
    %147 = vector.broadcast %cst_50 : f32 to vector<8x384xf32>
    %148 = arith.mulf %147, %146 : vector<8x384xf32>
    %149 = math.tanh %148 : vector<8x384xf32>
    %cst_51 = arith.constant 5.000000e-01 : f32
    %150 = vector.broadcast %cst_51 : f32 to vector<8x384xf32>
    %151 = arith.mulf %150, %149 : vector<8x384xf32>
    %cst_52 = arith.constant 5.000000e-01 : f32
    %152 = vector.broadcast %cst_52 : f32 to vector<8x384xf32>
    %153 = arith.addf %151, %152 : vector<8x384xf32>
    %154 = vector.extract_strided_slice %145 {offsets = [0, 384], sizes = [8, 128], strides = [1, 1]} : vector<8x512xf32> to vector<8x128xf32>
    %155 = math.tanh %154 : vector<8x128xf32>
    %156 = vector.extract_strided_slice %153 {offsets = [0, 0], sizes = [8, 128], strides = [1, 1]} : vector<8x384xf32> to vector<8x128xf32>
    %157 = vector.extract_strided_slice %153 {offsets = [0, 128], sizes = [8, 128], strides = [1, 1]} : vector<8x384xf32> to vector<8x128xf32>
    %158 = vector.extract_strided_slice %153 {offsets = [0, 256], sizes = [8, 128], strides = [1, 1]} : vector<8x384xf32> to vector<8x128xf32>
    %159 = arith.mulf %157, %135 : vector<8x128xf32>
    %160 = arith.mulf %156, %155 : vector<8x128xf32>
    %161 = arith.addf %159, %160 : vector<8x128xf32>
    %162 = math.tanh %161 : vector<8x128xf32>
    %163 = arith.mulf %158, %162 : vector<8x128xf32>
    %164 = arith.index_cast %141 : i32 to index
    %c0_53 = arith.constant 0 : index
    %165 = vector.load %arg16[%164, %c0_53] : memref<64x512xf32, #tpu.memory_space<vmem>>, vector<8x128xf32>
    tpu.vector_store %arg16[%164, %c0_53], %163 {strides = array<i32>} : memref<64x512xf32, #tpu.memory_space<vmem>>, vector<8x128xf32>,
    %c6_i32 = arith.constant 6 : i32
    %c8_i32_54 = arith.constant 8 : i32
    %166 = arith.muli %c6_i32, %c8_i32_54 : i32
    %167 = tpu.assume_multiple %166, 8 : i32
    %168 = arith.index_cast %167 : i32 to index
    %c0_55 = arith.constant 0 : index
    %169 = vector.load %arg16[%168, %c0_55] : memref<64x512xf32, #tpu.memory_space<vmem>>, vector<8x512xf32>
    %cst_56 = arith.constant dense<0.000000e+00> : vector<8x512xf32>
    %170 = tpu.matmul %163, %7, %cst_56 {dimension_numbers = #tpu.dot_dimension_numbers<[1], [0], [0], [1], [0, 0, 1, 1], [], []>} : vector<8x128xf32>, vector<128x512xf32>, vector<8x512xf32> -> vector<8x512xf32>
    %171 = arith.addf %169, %170 : vector<8x512xf32>
    %172 = vector.extract_strided_slice %171 {offsets = [0, 0], sizes = [8, 384], strides = [1, 1]} : vector<8x512xf32> to vector<8x384xf32>
    %cst_57 = arith.constant 5.000000e-01 : f32
    %173 = vector.broadcast %cst_57 : f32 to vector<8x384xf32>
    %174 = arith.mulf %173, %172 : vector<8x384xf32>
    %175 = math.tanh %174 : vector<8x384xf32>
    %cst_58 = arith.constant 5.000000e-01 : f32
    %176 = vector.broadcast %cst_58 : f32 to vector<8x384xf32>
    %177 = arith.mulf %176, %175 : vector<8x384xf32>
    %cst_59 = arith.constant 5.000000e-01 : f32
    %178 = vector.broadcast %cst_59 : f32 to vector<8x384xf32>
    %179 = arith.addf %177, %178 : vector<8x384xf32>
    %180 = vector.extract_strided_slice %171 {offsets = [0, 384], sizes = [8, 128], strides = [1, 1]} : vector<8x512xf32> to vector<8x128xf32>
    %181 = math.tanh %180 : vector<8x128xf32>
    %182 = vector.extract_strided_slice %179 {offsets = [0, 0], sizes = [8, 128], strides = [1, 1]} : vector<8x384xf32> to vector<8x128xf32>
    %183 = vector.extract_strided_slice %179 {offsets = [0, 128], sizes = [8, 128], strides = [1, 1]} : vector<8x384xf32> to vector<8x128xf32>
    %184 = vector.extract_strided_slice %179 {offsets = [0, 256], sizes = [8, 128], strides = [1, 1]} : vector<8x384xf32> to vector<8x128xf32>
    %185 = arith.mulf %183, %161 : vector<8x128xf32>
    %186 = arith.mulf %182, %181 : vector<8x128xf32>
    %187 = arith.addf %185, %186 : vector<8x128xf32>
    %188 = math.tanh %187 : vector<8x128xf32>
    %189 = arith.mulf %184, %188 : vector<8x128xf32>
    %190 = arith.index_cast %167 : i32 to index
    %c0_60 = arith.constant 0 : index
    %191 = vector.load %arg16[%190, %c0_60] : memref<64x512xf32, #tpu.memory_space<vmem>>, vector<8x128xf32>
    tpu.vector_store %arg16[%190, %c0_60], %189 {strides = array<i32>} : memref<64x512xf32, #tpu.memory_space<vmem>>, vector<8x128xf32>,
    %c7_i32 = arith.constant 7 : i32
    %c8_i32_61 = arith.constant 8 : i32
    %192 = arith.muli %c7_i32, %c8_i32_61 : i32
    %193 = tpu.assume_multiple %192, 8 : i32
    %194 = arith.index_cast %193 : i32 to index
    %c0_62 = arith.constant 0 : index
    %195 = vector.load %arg16[%194, %c0_62] : memref<64x512xf32, #tpu.memory_space<vmem>>, vector<8x512xf32>
    %cst_63 = arith.constant dense<0.000000e+00> : vector<8x512xf32>
    %196 = tpu.matmul %189, %7, %cst_63 {dimension_numbers = #tpu.dot_dimension_numbers<[1], [0], [0], [1], [0, 0, 1, 1], [], []>} : vector<8x128xf32>, vector<128x512xf32>, vector<8x512xf32> -> vector<8x512xf32>
    %197 = arith.addf %195, %196 : vector<8x512xf32>
    %198 = vector.extract_strided_slice %197 {offsets = [0, 0], sizes = [8, 384], strides = [1, 1]} : vector<8x512xf32> to vector<8x384xf32>
    %cst_64 = arith.constant 5.000000e-01 : f32
    %199 = vector.broadcast %cst_64 : f32 to vector<8x384xf32>
    %200 = arith.mulf %199, %198 : vector<8x384xf32>
    %201 = math.tanh %200 : vector<8x384xf32>
    %cst_65 = arith.constant 5.000000e-01 : f32
    %202 = vector.broadcast %cst_65 : f32 to vector<8x384xf32>
    %203 = arith.mulf %202, %201 : vector<8x384xf32>
    %cst_66 = arith.constant 5.000000e-01 : f32
    %204 = vector.broadcast %cst_66 : f32 to vector<8x384xf32>
    %205 = arith.addf %203, %204 : vector<8x384xf32>
    %206 = vector.extract_strided_slice %197 {offsets = [0, 384], sizes = [8, 128], strides = [1, 1]} : vector<8x512xf32> to vector<8x128xf32>
    %207 = math.tanh %206 : vector<8x128xf32>
    %208 = vector.extract_strided_slice %205 {offsets = [0, 0], sizes = [8, 128], strides = [1, 1]} : vector<8x384xf32> to vector<8x128xf32>
    %209 = vector.extract_strided_slice %205 {offsets = [0, 128], sizes = [8, 128], strides = [1, 1]} : vector<8x384xf32> to vector<8x128xf32>
    %210 = vector.extract_strided_slice %205 {offsets = [0, 256], sizes = [8, 128], strides = [1, 1]} : vector<8x384xf32> to vector<8x128xf32>
    %211 = arith.mulf %209, %187 : vector<8x128xf32>
    %212 = arith.mulf %208, %207 : vector<8x128xf32>
    %213 = arith.addf %211, %212 : vector<8x128xf32>
    %214 = math.tanh %213 : vector<8x128xf32>
    %215 = arith.mulf %210, %214 : vector<8x128xf32>
    %216 = arith.index_cast %193 : i32 to index
    %c0_67 = arith.constant 0 : index
    %217 = vector.load %arg16[%216, %c0_67] : memref<64x512xf32, #tpu.memory_space<vmem>>, vector<8x128xf32>
    tpu.vector_store %arg16[%216, %c0_67], %215 {strides = array<i32>} : memref<64x512xf32, #tpu.memory_space<vmem>>, vector<8x128xf32>,
    %c8_i32_68 = arith.constant 8 : i32
    %c0_69 = arith.constant 0 : index
    %c0_70 = arith.constant 0 : index
    %218 = vector.load %arg14[%c0_69, %c0_70] : memref<8x128xf32, #tpu.memory_space<vmem>>, vector<8x128xf32>
    tpu.vector_store %arg14[%c0_69, %c0_70], %215 {strides = array<i32>} : memref<8x128xf32, #tpu.memory_space<vmem>>, vector<8x128xf32>,
    %c0_71 = arith.constant 0 : index
    %c0_72 = arith.constant 0 : index
    %219 = vector.load %arg15[%c0_71, %c0_72] : memref<8x128xf32, #tpu.memory_space<vmem>>, vector<8x128xf32>
    tpu.vector_store %arg15[%c0_71, %c0_72], %213 {strides = array<i32>} : memref<8x128xf32, #tpu.memory_space<vmem>>, vector<8x128xf32>,
    %c0_73 = arith.constant 0 : index
    %c0_74 = arith.constant 0 : index
    %220 = vector.load %arg16[%c0_73, %c0_74] : memref<64x512xf32, #tpu.memory_space<vmem>>, vector<64x128xf32>
    %c0_75 = arith.constant 0 : index
    %c0_76 = arith.constant 0 : index
    %221 = vector.load %arg7[%c0_75, %c0_76] : memref<128x128xf32, #tpu.memory_space<vmem>>, vector<128x128xf32>
    %cst_77 = arith.constant dense<0.000000e+00> : vector<64x128xf32>
    %222 = tpu.matmul %220, %221, %cst_77 {dimension_numbers = #tpu.dot_dimension_numbers<[1], [0], [0], [1], [0, 0, 1, 1], [], []>} : vector<64x128xf32>, vector<128x128xf32>, vector<64x128xf32> -> vector<64x128xf32>
    %c0_78 = arith.constant 0 : index
    %c0_79 = arith.constant 0 : index
    %223 = vector.load %arg8[%c0_78, %c0_79] : memref<1x128xf32, #tpu.memory_space<vmem>>, vector<1x128xf32>
    %224 = vector.broadcast %223 : vector<1x128xf32> to vector<64x128xf32>
    %225 = arith.addf %222, %224 : vector<64x128xf32>
    %cst_80 = arith.constant 0.000000e+00 : f32
    %226 = vector.broadcast %cst_80 : f32 to vector<64x128xf32>
    %227 = arith.maximumf %225, %226 : vector<64x128xf32>
    %c0_81 = arith.constant 0 : index
    %c0_82 = arith.constant 0 : index
    %228 = vector.load %arg9[%c0_81, %c0_82] : memref<128x128xf32, #tpu.memory_space<vmem>>, vector<128x128xf32>
    %cst_83 = arith.constant dense<0.000000e+00> : vector<64x128xf32>
    %229 = tpu.matmul %227, %228, %cst_83 {dimension_numbers = #tpu.dot_dimension_numbers<[1], [0], [0], [1], [0, 0, 1, 1], [], []>} : vector<64x128xf32>, vector<128x128xf32>, vector<64x128xf32> -> vector<64x128xf32>
    %c0_84 = arith.constant 0 : index
    %c0_85 = arith.constant 0 : index
    %230 = vector.load %arg10[%c0_84, %c0_85] : memref<1x128xf32, #tpu.memory_space<vmem>>, vector<1x128xf32>
    %231 = vector.broadcast %230 : vector<1x128xf32> to vector<64x128xf32>
    %232 = arith.addf %229, %231 : vector<64x128xf32>
    %cst_86 = arith.constant 0.000000e+00 : f32
    %233 = vector.broadcast %cst_86 : f32 to vector<64x128xf32>
    %234 = arith.maximumf %232, %233 : vector<64x128xf32>
    %c0_87 = arith.constant 0 : index
    %c0_88 = arith.constant 0 : index
    %235 = vector.load %arg11[%c0_87, %c0_88] : memref<128x128xf32, #tpu.memory_space<vmem>>, vector<128x128xf32>
    %cst_89 = arith.constant dense<0.000000e+00> : vector<64x128xf32>
    %236 = tpu.matmul %234, %235, %cst_89 {dimension_numbers = #tpu.dot_dimension_numbers<[1], [0], [0], [1], [0, 0, 1, 1], [], []>} : vector<64x128xf32>, vector<128x128xf32>, vector<64x128xf32> -> vector<64x128xf32>
    %c0_90 = arith.constant 0 : index
    %c0_91 = arith.constant 0 : index
    %237 = vector.load %arg12[%c0_90, %c0_91] : memref<1x128xf32, #tpu.memory_space<vmem>>, vector<1x128xf32>
    %238 = vector.broadcast %237 : vector<1x128xf32> to vector<64x128xf32>
    %239 = arith.addf %236, %238 : vector<64x128xf32>
    %240 = math.tanh %239 : vector<64x128xf32>
    %c0_92 = arith.constant 0 : index
    %c0_93 = arith.constant 0 : index
    %241 = vector.load %arg13[%c0_92, %c0_93] : memref<64x128xf32, #tpu.memory_space<vmem>>, vector<64x128xf32>
    tpu.vector_store %arg13[%c0_92, %c0_93], %240 {strides = array<i32>} : memref<64x128xf32, #tpu.memory_space<vmem>>, vector<64x128xf32>,
    return
  }
  func.func @transform_0(%arg0: i32) -> (i32, i32) {
    %c0_i32 = arith.constant 0 : i32
    %c0_i32_0 = arith.constant 0 : i32
    %c0_i32_1 = arith.constant 0 : i32
    return %c0_i32, %c0_i32_0 : i32, i32
  }
  func.func @transform_1(%arg0: i32) -> (i32, i32) {
    %c0_i32 = arith.constant 0 : i32
    %c0_i32_0 = arith.constant 0 : i32
    %c0_i32_1 = arith.constant 0 : i32
    return %c0_i32, %c0_i32_0 : i32, i32
  }
  func.func @transform_2(%arg0: i32) -> (i32, i32) {
    %c0_i32 = arith.constant 0 : i32
    %c0_i32_0 = arith.constant 0 : i32
    %c0_i32_1 = arith.constant 0 : i32
    return %c0_i32, %c0_i32_0 : i32, i32
  }
  func.func @transform_3(%arg0: i32) -> (i32, i32) {
    %c0_i32 = arith.constant 0 : i32
    %c0_i32_0 = arith.constant 0 : i32
    %c0_i32_1 = arith.constant 0 : i32
    return %c0_i32, %c0_i32_0 : i32, i32
  }
  func.func @transform_4(%arg0: i32) -> (i32, i32) {
    %c0_i32 = arith.constant 0 : i32
    %c0_i32_0 = arith.constant 0 : i32
    %c0_i32_1 = arith.constant 0 : i32
    return %c0_i32, %c0_i32_0 : i32, i32
  }
  func.func @transform_5(%arg0: i32) -> (i32, i32) {
    %c0_i32 = arith.constant 0 : i32
    %c0_i32_0 = arith.constant 0 : i32
    %c0_i32_1 = arith.constant 0 : i32
    return %c0_i32, %c0_i32_0 : i32, i32
  }
  func.func @transform_6(%arg0: i32) -> (i32, i32) {
    %c0_i32 = arith.constant 0 : i32
    %c0_i32_0 = arith.constant 0 : i32
    %c0_i32_1 = arith.constant 0 : i32
    return %c0_i32, %c0_i32_0 : i32, i32
  }
  func.func @transform_7(%arg0: i32) -> (i32, i32) {
    %c0_i32 = arith.constant 0 : i32
    %c0_i32_0 = arith.constant 0 : i32
    %c0_i32_1 = arith.constant 0 : i32
    return %c0_i32, %c0_i32_0 : i32, i32
  }
  func.func @transform_8(%arg0: i32) -> (i32, i32) {
    %c0_i32 = arith.constant 0 : i32
    %c0_i32_0 = arith.constant 0 : i32
    %c0_i32_1 = arith.constant 0 : i32
    return %c0_i32, %c0_i32_0 : i32, i32
  }
  func.func @transform_9(%arg0: i32) -> (i32, i32) {
    %c0_i32 = arith.constant 0 : i32
    %c0_i32_0 = arith.constant 0 : i32
    %c0_i32_1 = arith.constant 0 : i32
    return %c0_i32, %c0_i32_0 : i32, i32
  }
  func.func @transform_10(%arg0: i32) -> (i32, i32) {
    %c0_i32 = arith.constant 0 : i32
    %c0_i32_0 = arith.constant 0 : i32
    %c0_i32_1 = arith.constant 0 : i32
    return %c0_i32, %c0_i32_0 : i32, i32
  }
  func.func @transform_11(%arg0: i32) -> (i32, i32) {
    %c0_i32 = arith.constant 0 : i32
    %c0_i32_0 = arith.constant 0 : i32
    %c0_i32_1 = arith.constant 0 : i32
    return %c0_i32, %c0_i32_0 : i32, i32
  }
  func.func @transform_12(%arg0: i32) -> (i32, i32) {
    %c0_i32 = arith.constant 0 : i32
    %c0_i32_0 = arith.constant 0 : i32
    %c0_i32_1 = arith.constant 0 : i32
    return %c0_i32, %c0_i32_0 : i32, i32
  }
  func.func @transform_13(%arg0: i32) -> (i32, i32) {
    %c0_i32 = arith.constant 0 : i32
    %c0_i32_0 = arith.constant 0 : i32
    %c0_i32_1 = arith.constant 0 : i32
    return %c0_i32, %c0_i32_0 : i32, i32
  }
  func.func @transform_14(%arg0: i32) -> (i32, i32) {
    %c0_i32 = arith.constant 0 : i32
    %c0_i32_0 = arith.constant 0 : i32
    %c0_i32_1 = arith.constant 0 : i32
    return %c0_i32, %c0_i32_0 : i32, i32
  }
}

</mosaic_0001>

<bundles_post_ra>
// kernel: recurrent_ppo_forward.1
= control target key start
LH: loop header
LB: loop body
LE: loop exit
PB: predicated region body
PF: predicated region fallthrough
CT: control target
= control target key end

     0   :  { %vm107_vm0 = vcmask 1044480   ;;  %vm3290_vm1 = vmmov 1   ;;  %v3291_v3 = vmov 0.0   ;;  %vm82_vm3 = vcmask 105472   ;;  %s4319_s3 = inlined_call_operand.vmem [shape: f32[13,512], index: 3, kind: input, shape index: {}]   ;;  %s4320_s0 = inlined_call_operand.vmem [shape: f32[64,13], index: 0, kind: input, shape index: {}]   ;;  %s4321_s4 = inlined_call_operand.vmem [shape: f32[128,512], index: 4, kind: input, shape index: {}]   ;;  %s4322_s1 = inlined_call_operand.vmem [shape: f32[8,128], index: 1, kind: input, shape index: {}]   ;;  %s4323_s5 = inlined_call_operand.vmem [shape: f32[1,512], index: 5, kind: input, shape index: {}]   ;;  %s4324_s2 = inlined_call_operand.vmem [shape: f32[8,128], index: 2, kind: input, shape index: {}]   ;;  %s4325_s6 = inlined_call_operand.vmem [shape: f32[128,128], index: 6, kind: input, shape index: {}]   ;;  %s4326_s8 = inlined_call_operand.vmem [shape: f32[128,128], index: 8, kind: input, shape index: {}]   ;;  %s4327_s10 = inlined_call_operand.vmem [shape: f32[128,128], index: 10, kind: input, shape index: {}]   ;;  %s4328_s14 = inlined_call_operand.vmem [shape: f32[8,128], index: 14, kind: output, shape index: {2}]   ;;  %s4329_s7 = inlined_call_operand.vmem [shape: f32[1,128], index: 7, kind: input, shape index: {}]   ;;  %s4330_s13 = inlined_call_operand.vmem [shape: f32[8,128], index: 13, kind: output, shape index: {1}]   ;;  %s4331_s9 = inlined_call_operand.vmem [shape: f32[1,128], index: 9, kind: input, shape index: {}]   ;;  %s4332_s11 = inlined_call_operand.vmem [shape: f32[1,128], index: 11, kind: input, shape index: {}]   ;;  %s4333_s12 = inlined_call_operand.vmem [shape: f32[64,128], index: 12, kind: output, shape index: {0}]  }
   0x1   :  { %v53_v0 = vld [vmem:[%s4319_s3 + $0x8] sm:$0xff]  ;;  %vm3373_vm2 = vmpackc.low %vm107_vm0, %vm3290_vm1  ;;  %184 = vmatprep.mubr.f32.mxu0 %v3291_v3  ;;  %297 = vmatprep.mubr.f32.mxu1 %v3291_v3  ;;  %v55_v5 = vld [vmem:[%s4319_s3 + $0x18] sm:$0xff] }
   0x2   :  { %v57_v1 = vld [vmem:[%s4319_s3 + $0x28] sm:$0x1f]  ;;  %v59_v6 = vld [vmem:[%s4319_s3 + $0x38] sm:$0x1f]  ;;  %v52_v7 = vld [vmem:[%s4319_s3] sm:$0xff] }
   0x3   :  { %v2492_v4 = vpack.c.bf16 %v57_v1, %v53_v0  ;;  %v2498_v8 = vpack.c.bf16 %v59_v6, %v55_v5  ;;  %v56_v9 = vld [vmem:[%s4319_s3 + $0x20] sm:$0x1f]  ;;  %v54_v10 = vld [vmem:[%s4319_s3 + $0x10] sm:$0xff]  ;;  %v379_v15 = vld [vmem:[%s4321_s4 + $0x8] sm:$0xff] }
   0x4   :  { %v58_v11 = vld [vmem:[%s4319_s3 + $0x30] sm:$0x1f]  ;;  %v2495_v12 = vpack.c.bf16 %v56_v9, %v52_v7  ;;  %v44_v14 = vld [vmem:[%s4320_s0] sm:$0xff]  ;;  %v383_v16 = vld [vmem:[%s4321_s4 + $0x28] sm:$0xff] }
   0x5   :  { %2494 = vmatprep.subr.msk.bf16.mxu0 %vm3373_vm2, %v2492_v4  ;;  %v2501_v13 = vpack.c.bf16 %v58_v11, %v54_v10  ;;  %2500 = vmatprep.subr.msk.bf16.mxu1 %vm3373_vm2, %v2498_v8  ;;  %v3410_v17 = vpack.c.bf16 %v383_v16, %v379_v15  ;;  %v381_v18 = vld [vmem:[%s4321_s4 + $0x18] sm:$0xff]  ;;  %v378_v20 = vld [vmem:[%s4321_s4] sm:$0xff]  ;;  %v380_v23 = vld [vmem:[%s4321_s4 + $0x10] sm:$0xff] }
   0x6   :  { %v385_v19 = vld [vmem:[%s4321_s4 + $0x38] sm:$0xff]  ;;  %2497 = vmatpush1.bf16.msk.msra.mxu0 %vm3373_vm2, %v2495_v12  ;;  %v382_v22 = vld [vmem:[%s4321_s4 + $0x20] sm:$0xff]  ;;  %v384_v24 = vld [vmem:[%s4321_s4 + $0x30] sm:$0xff] }
   0x7   :  { %2503 = vmatpush1.bf16.msk.msra.mxu1 %vm3373_vm2, %v2501_v13  ;;  %v3425_v21 = vpack.c.bf16 %v385_v19, %v381_v18  ;;  %2505 = vmatprep.subr.bf16.mxu0 %v3410_v17  ;;  %v3437_v25 = vpack.c.bf16 %v382_v22, %v378_v20  ;;  %v3439_v26 = vpack.c.bf16 %v384_v24, %v380_v23  ;;  %v387_v27 = vld [vmem:[%s4321_s4 + $0x48] sm:$0xff]  ;;  %v389_v30 = vld [vmem:[%s4321_s4 + $0x58] sm:$0xff]  ;;  %v386_v32 = vld [vmem:[%s4321_s4 + $0x40] sm:$0xff] }
   0x8   :  { %v391_v28 = vld [vmem:[%s4321_s4 + $0x68] sm:$0xff]  ;;  %v393_v31 = vld [vmem:[%s4321_s4 + $0x78] sm:$0xff]  ;;  %v390_v34 = vld [vmem:[%s4321_s4 + $0x60] sm:$0xff] }
   0x9   :  { %2537 = vmatprep.subr.bf16.mxu1 %v3425_v21  ;;  %v3448_v29 = vpack.c.bf16 %v391_v28, %v387_v27  ;;  %2267 = vmatmul.mubr.msk.f32.vlgmr.msra.gmra.mrb[0].mxu0 %vm82_vm3, %v44_v14  ;;  %v3461_v33 = vpack.c.bf16 %v393_v31, %v389_v30  ;;  %v388_v35 = vld [vmem:[%s4321_s4 + $0x50] sm:$0xff]  ;;  %v45_v37 = vld [vmem:[%s4320_s0 + $0x8] sm:$0xff]  ;;  %v3477_v38 = vpack.c.bf16 %v390_v34, %v386_v32  ;;  %v397_v42 = vld [vmem:[%s4321_s4 + $0x98] sm:$0xff] }
   0xa   :  { %2277 = vmatmul.mubr.msk.f32.vlgmr.msra.gmra.mrb[0].mxu1 %vm82_vm3, %v44_v14  ;;  %v392_v36 = vld [vmem:[%s4321_s4 + $0x70] sm:$0xff]  ;;  %2507 = vmatpush1.bf16.msra.mxu0 %v3437_v25  ;;  %v395_v40 = vld [vmem:[%s4321_s4 + $0x88] sm:$0xff]  ;;  %v401_v43 = vld [vmem:[%s4321_s4 + $0xb8] sm:$0xff] }
   0xb   :  { %2539 = vmatpush1.bf16.msra.mxu1 %v3439_v26  ;;  %v3479_v39 = vpack.c.bf16 %v392_v36, %v388_v35  ;;  %v399_v41 = vld [vmem:[%s4321_s4 + $0xa8] sm:$0xff]  ;;  %190 = vmatprep.mubr.f32.mxu0 %v3291_v3  ;;  %v394_v44 = vld [vmem:[%s4321_s4 + $0x80] sm:$0xff]  ;;  %v3502_v46 = vpack.c.bf16 %v401_v43, %v397_v42  ;;  %v396_v48 = vld [vmem:[%s4321_s4 + $0x90] sm:$0xff] }
   0xc   :  { %303 = vmatprep.mubr.f32.mxu1 %v3291_v3  ;;  %2509 = vmatprep.subr.bf16.mxu0 %v3448_v29  ;;  %v3500_v45 = vpack.c.bf16 %v399_v41, %v395_v40  ;;  %v398_v47 = vld [vmem:[%s4321_s4 + $0xa0] sm:$0xff]  ;;  %v400_v49 = vld [vmem:[%s4321_s4 + $0xb0] sm:$0xff]  ;;  %v403_v51 = vld [vmem:[%s4321_s4 + $0xc8] sm:$0xff] }
   0xd   :  { %2541 = vmatprep.subr.bf16.mxu1 %v3461_v33  ;;  %2268 = vmatmul.mubr.msk.f32.gmra.mrb[2].mxu0 %vm82_vm3, %v45_v37  ;;  %v46_v50 = vld [vmem:[%s4320_s0 + $0x10] sm:$0xff]  ;;  %v407_v52 = vld [vmem:[%s4321_s4 + $0xe8] sm:$0xff]  ;;  %v3526_v53 = vpack.c.bf16 %v398_v47, %v394_v44  ;;  %v3528_v54 = vpack.c.bf16 %v400_v49, %v396_v48  ;;  %v405_v55 = vld [vmem:[%s4321_s4 + $0xd8] sm:$0xff] }
   0xe   :  { %2278 = vmatmul.mubr.msk.f32.gmra.mrb[2].mxu1 %vm82_vm3, %v45_v37  ;;  %2511 = vmatpush1.bf16.msra.mxu0 %v3477_v38  ;;  %v409_v56 = vld [vmem:[%s4321_s4 + $0xf8] sm:$0xff]  ;;  %v402_v57 = vld [vmem:[%s4321_s4 + $0xc0] sm:$0xff]  ;;  %v404_v59 = vld [vmem:[%s4321_s4 + $0xd0] sm:$0xff]  ;;  %v3552_v61 = vpack.c.bf16 %v407_v52, %v403_v51 }
   0xf   :  { %2543 = vmatpush1.bf16.msra.mxu1 %v3479_v39  ;;  %196 = vmatprep.mubr.f32.mxu0 %v3291_v3  ;;  %v406_v58 = vld [vmem:[%s4321_s4 + $0xe0] sm:$0xff]  ;;  %v408_v60 = vld [vmem:[%s4321_s4 + $0xf0] sm:$0xff]  ;;  %v3554_v62 = vpack.c.bf16 %v409_v56, %v405_v55  ;;  %v411_v63 = vld [vmem:[%s4321_s4 + $0x108] sm:$0xff] }
  0x10   :  { %309 = vmatprep.mubr.f32.mxu1 %v3291_v3  ;;  %2513 = vmatprep.subr.bf16.mxu0 %v3500_v45  ;;  %v415_v0 = vld [vmem:[%s4321_s4 + $0x128] sm:$0xff]  ;;  %v413_v1 = vld [vmem:[%s4321_s4 + $0x118] sm:$0xff]  ;;  %v3575_v5 = vpack.c.bf16 %v406_v58, %v402_v57  ;;  %v3577_v6 = vpack.c.bf16 %v408_v60, %v404_v59  ;;  %v410_v7 = vld [vmem:[%s4321_s4 + $0x100] sm:$0xff] }
  0x11   :  { %2545 = vmatprep.subr.bf16.mxu1 %v3502_v46  ;;  %2269 = vmatmul.mubr.msk.f32.gmra.mrb[4].mxu0 %vm82_vm3, %v46_v50  ;;  %v417_v2 = vld [vmem:[%s4321_s4 + $0x138] sm:$0xff]  ;;  %v414_v8 = vld [vmem:[%s4321_s4 + $0x120] sm:$0xff]  ;;  %v412_v9 = vld [vmem:[%s4321_s4 + $0x110] sm:$0xff]  ;;  %v3595_v11 = vpack.c.bf16 %v415_v0, %v411_v63 }
  0x12   :  { %2279 = vmatmul.mubr.msk.f32.gmra.mrb[4].mxu1 %vm82_vm3, %v46_v50  ;;  %2515 = vmatpush1.bf16.msra.mxu0 %v3526_v53  ;;  %v47_v4 = vld [vmem:[%s4320_s0 + $0x18] sm:$0xff]  ;;  %v416_v10 = vld [vmem:[%s4321_s4 + $0x130] sm:$0xff]  ;;  %v3597_v12 = vpack.c.bf16 %v417_v2, %v413_v1  ;;  %v419_v13 = vld [vmem:[%s4321_s4 + $0x148] sm:$0xff]  ;;  %v3618_v19 = vpack.c.bf16 %v414_v8, %v410_v7 }
  0x13   :  { %2547 = vmatpush1.bf16.msra.mxu1 %v3528_v54  ;;  %202 = vmatprep.mubr.f32.mxu0 %v3291_v3  ;;  %v423_v14 = vld [vmem:[%s4321_s4 + $0x168] sm:$0xff]  ;;  %v421_v15 = vld [vmem:[%s4321_s4 + $0x158] sm:$0xff]  ;;  %v48_v18 = vld [vmem:[%s4320_s0 + $0x20] sm:$0xff]  ;;  %v3620_v20 = vpack.c.bf16 %v416_v10, %v412_v9  ;;  %v62_v9 = vlaneseq }
  0x14   :  { %315 = vmatprep.mubr.f32.mxu1 %v3291_v3  ;;  %2517 = vmatprep.subr.bf16.mxu0 %v3552_v61  ;;  %v425_v16 = vld [vmem:[%s4321_s4 + $0x178] sm:$0xff]  ;;  %v418_v22 = vld [vmem:[%s4321_s4 + $0x140] sm:$0xff]  ;;  %v420_v24 = vld [vmem:[%s4321_s4 + $0x150] sm:$0xff]  ;;  %v3638_v28 = vpack.c.bf16 %v423_v14, %v419_v13 }
  0x15   :  { %2549 = vmatprep.subr.bf16.mxu1 %v3554_v62  ;;  %2270 = vmatmul.mubr.msk.f32.gmra.mrb[6].mxu0 %vm82_vm3, %v47_v4  ;;  %v422_v23 = vld [vmem:[%s4321_s4 + $0x160] sm:$0xff]  ;;  %v424_v27 = vld [vmem:[%s4321_s4 + $0x170] sm:$0xff]  ;;  %v3640_v30 = vpack.c.bf16 %v425_v16, %v421_v15  ;;  %v427_v31 = vld [vmem:[%s4321_s4 + $0x188] sm:$0xff]  ;;  %v63_v10 = vshrl.u32 %v62_v9, 7 }
  0x16   :  { %2280 = vmatmul.mubr.msk.f32.gmra.mrb[6].mxu1 %vm82_vm3, %v47_v4  ;;  %2519 = vmatpush1.bf16.msra.mxu0 %v3575_v5  ;;  %v431_v32 = vld [vmem:[%s4321_s4 + $0x1a8] sm:$0xff]  ;;  %v429_v34 = vld [vmem:[%s4321_s4 + $0x198] sm:$0xff]  ;;  %v3661_v37 = vpack.c.bf16 %v422_v23, %v418_v22  ;;  %v3663_v40 = vpack.c.bf16 %v424_v27, %v420_v24  ;;  %v426_v41 = vld [vmem:[%s4321_s4 + $0x180] sm:$0xff] }
  0x17   :  { %2551 = vmatpush1.bf16.msra.mxu1 %v3577_v6  ;;  %208 = vmatprep.mubr.f32.mxu0 %v3291_v3  ;;  %v433_v35 = vld [vmem:[%s4321_s4 + $0x1b8] sm:$0xff]  ;;  %v49_v36 = vld [vmem:[%s4320_s0 + $0x28] sm:$0xff]  ;;  %v430_v42 = vld [vmem:[%s4321_s4 + $0x1a0] sm:$0xff]  ;;  %v3681_v47 = vpack.c.bf16 %v431_v32, %v427_v31  ;;  %v64_v13 = vsub.s32 0, %v63_v10  ;;  %v68_v15 = vsub.s32 1, %v63_v10 }
  0x18   :  { %321 = vmatprep.mubr.f32.mxu1 %v3291_v3  ;;  %2521 = vmatprep.subr.bf16.mxu0 %v3595_v11  ;;  %v428_v43 = vld [vmem:[%s4321_s4 + $0x190] sm:$0xff]  ;;  %v3683_v48 = vpack.c.bf16 %v433_v35, %v429_v34  ;;  %v435_v49 = vld [vmem:[%s4321_s4 + $0x1c8] sm:$0xff]  ;;  %v437_v51 = vld [vmem:[%s4321_s4 + $0x1d8] sm:$0xff]  ;;  %v3704_v56 = vpack.c.bf16 %v430_v42, %v426_v41  ;;  %v72_v35 = vsub.s32 2, %v63_v10 }
  0x19   :  { %2553 = vmatprep.subr.bf16.mxu1 %v3597_v12  ;;  %2271 = vmatmul.mubr.msk.f32.gmra.mrb[8].mxu0 %vm82_vm3, %v48_v18  ;;  %v432_v44 = vld [vmem:[%s4321_s4 + $0x1b0] sm:$0xff]  ;;  %v439_v50 = vld [vmem:[%s4321_s4 + $0x1e8] sm:$0xff]  ;;  %v441_v52 = vld [vmem:[%s4321_s4 + $0x1f8] sm:$0xff] }
  0x1a   :  { %2281 = vmatmul.mubr.msk.f32.gmra.mrb[8].mxu1 %vm82_vm3, %v48_v18  ;;  %2523 = vmatpush1.bf16.msra.mxu0 %v3618_v19  ;;  %v50_v55 = vld [vmem:[%s4320_s0 + $0x30] sm:$0xff]  ;;  %v3706_v57 = vpack.c.bf16 %v432_v44, %v428_v43  ;;  %v434_v58 = vld [vmem:[%s4321_s4 + $0x1c0] sm:$0xff]  ;;  %v3724_v0 = vpack.c.bf16 %v439_v50, %v435_v49  ;;  %v3726_v1 = vpack.c.bf16 %v441_v52, %v437_v51  ;;  %v51_v2 = vld [vmem:[%s4320_s0 + $0x38] sm:$0xff]  ;;  %v76_v18 = vsub.s32 3, %v63_v10 }
  0x1b   :  { %2555 = vmatpush1.bf16.msra.mxu1 %v3620_v20  ;;  %214 = vmatprep.mubr.f32.mxu0 %v3291_v3  ;;  %v438_v59 = vld [vmem:[%s4321_s4 + $0x1e0] sm:$0xff]  ;;  %v436_v60 = vld [vmem:[%s4321_s4 + $0x1d0] sm:$0xff] }
  0x1c   :  { %327 = vmatprep.mubr.f32.mxu1 %v3291_v3  ;;  %2525 = vmatprep.subr.bf16.mxu0 %v3638_v28  ;;  %v440_v63 = vld [vmem:[%s4321_s4 + $0x1f0] sm:$0xff]  ;;  %v3735_v4 = vpack.c.bf16 %v438_v59, %v434_v58  ;;  %v442_v8 = vld [vmem:[%s4322_s1] sm:$0xff] }
  0x1d   :  { %2557 = vmatprep.subr.bf16.mxu1 %v3640_v30  ;;  %2272 = vmatmul.mubr.msk.f32.gmra.mrb[10].mxu0 %vm82_vm3, %v49_v36  ;;  %v3737_v7 = vpack.c.bf16 %v440_v63, %v436_v60  ;;  %v60_v14 = vld [vmem:[%s4323_s5] sm:$0xf] }
  0x1e   :  { %2282 = vmatmul.mubr.msk.f32.gmra.mrb[10].mxu1 %vm82_vm3, %v49_v36  ;;  %2527 = vmatpush1.bf16.msra.mxu0 %v3661_v37  ;;  %v3791_v16 = vrot.slane %v60_v14, %v64_v13  ;;  %v3793_v22 = vrot.slane %v60_v14, %v68_v15  ;;  %v3796_v32 = vrot.slane %v60_v14, %v76_v18  ;;  %v443_v63 = vld [vmem:[%s4324_s2] sm:$0xff] }
  0x1f   :  { %2559 = vmatpush1.bf16.msra.mxu1 %v3663_v40  ;;  %220 = vmatprep.mubr.f32.mxu0 %v3291_v3  ;;  %v3800_v44 = vrot.slane %v60_v14, %v72_v35 }
  0x20   :  { %333 = vmatprep.mubr.f32.mxu1 %v3291_v3  ;;  %2529 = vmatprep.subr.bf16.mxu0 %v3681_v47 }
  0x21   :  { %2561 = vmatprep.subr.bf16.mxu1 %v3683_v48  ;;  %2273 = vmatmul.mubr.msk.f32.gmra.mrb[12].mxu0 %vm82_vm3, %v50_v55 }
  0x22   :  { %2283 = vmatmul.mubr.msk.f32.gmra.mrb[12].mxu1 %vm82_vm3, %v50_v55  ;;  %2531 = vmatpush1.bf16.msra.mxu0 %v3704_v56 }
  0x23   :  { %2563 = vmatpush1.bf16.msra.mxu1 %v3706_v57  ;;  %226 = vmatprep.mubr.f32.mxu0 %v3291_v3 }
  0x24   :  { %339 = vmatprep.mubr.f32.mxu1 %v3291_v3  ;;  %2533 = vmatprep.subr.bf16.mxu0 %v3724_v0 }
  0x25   :  { %2565 = vmatprep.subr.bf16.mxu1 %v3726_v1  ;;  %2274 = vmatmul.mubr.msk.f32.gmra.mrb[14].mxu0 %vm82_vm3, %v51_v2 }
  0x26   :  { %2284 = vmatmul.mubr.msk.f32.gmra.mrb[14].mxu1 %vm82_vm3, %v51_v2  ;;  %2535 = vmatpush1.bf16.msra.mxu0 %v3735_v4 }
  0x27   :  { %2567 = vmatpush1.bf16.msra.mxu1 %v3737_v7  ;;  %515 = vmatprep.mubr.f32.mxu0 %v3291_v3 }
  0x28   :  { %586 = vmatprep.mubr.f32.mxu1 %v3291_v3  ;;  %2569 = vmatprep.subr.bf16.mxu0 %v3410_v17 }
  0x29   :  { %2601 = vmatprep.subr.bf16.mxu1 %v3425_v21  ;;  %516 = vmatmul.mubr.f32.vlgmr.msra.gmra.mrb[0].mxu0 %v442_v8 }
  0x2a   :  { %587 = vmatmul.mubr.f32.vlgmr.msra.gmra.mrb[0].mxu1 %v442_v8  ;;  %2571 = vmatpush1.bf16.msra.mxu0 %v3437_v25 }
  0x2b   :  { %2603 = vmatpush1.bf16.msra.mxu1 %v3439_v26  ;;  %2573 = vmatprep.subr.bf16.mxu0 %v3448_v29 }
  0x2c   :  { %2605 = vmatprep.subr.bf16.mxu1 %v3461_v33  ;;  %687 = vmatprep.mubr.f32.mxu0 %v3291_v3 }
  0x2d   :  { %758 = vmatprep.mubr.f32.mxu1 %v3291_v3 }
  0x2e   :  { %2575 = vmatpush1.bf16.msra.mxu0 %v3477_v38 }
  0x2f   :  { %2607 = vmatpush1.bf16.msra.mxu1 %v3479_v39  ;;  %2577 = vmatprep.subr.bf16.mxu0 %v3500_v45 }
  0x30   :  { %2609 = vmatprep.subr.bf16.mxu1 %v3502_v46 }
  0x32   :  { %2579 = vmatpush1.bf16.msra.mxu0 %v3526_v53 }
  0x33   :  { %2611 = vmatpush1.bf16.msra.mxu1 %v3528_v54  ;;  %2581 = vmatprep.subr.bf16.mxu0 %v3552_v61 }
  0x34   :  { %2613 = vmatprep.subr.bf16.mxu1 %v3554_v62 }
  0x36   :  { %2583 = vmatpush1.bf16.msra.mxu0 %v3575_v5 }
  0x37   :  { %2615 = vmatpush1.bf16.msra.mxu1 %v3577_v6  ;;  %2585 = vmatprep.subr.bf16.mxu0 %v3595_v11 }
  0x38   :  { %2617 = vmatprep.subr.bf16.mxu1 %v3597_v12 }
  0x3a   :  { %2587 = vmatpush1.bf16.msra.mxu0 %v3618_v19 }
  0x3b   :  { %2619 = vmatpush1.bf16.msra.mxu1 %v3620_v20  ;;  %2589 = vmatprep.subr.bf16.mxu0 %v3638_v28 }
  0x3c   :  { %2621 = vmatprep.subr.bf16.mxu1 %v3640_v30 }
  0x3e   :  { %2591 = vmatpush1.bf16.msra.mxu0 %v3661_v37 }
  0x3f   :  { %2623 = vmatpush1.bf16.msra.mxu1 %v3663_v40  ;;  %2593 = vmatprep.subr.bf16.mxu0 %v3681_v47 }
  0x40   :  { %2625 = vmatprep.subr.bf16.mxu1 %v3683_v48 }
  0x42   :  { %2595 = vmatpush1.bf16.msra.mxu0 %v3704_v56 }
  0x43   :  { %2627 = vmatpush1.bf16.msra.mxu1 %v3706_v57  ;;  %2597 = vmatprep.subr.bf16.mxu0 %v3724_v0 }
  0x44   :  { %2629 = vmatprep.subr.bf16.mxu1 %v3726_v1 }
  0x46   :  { %2599 = vmatpush1.bf16.msra.mxu0 %v3735_v4 }
  0x47   :  { %2631 = vmatpush1.bf16.msra.mxu1 %v3737_v7  ;;  %2633 = vmatprep.subr.bf16.mxu0 %v3410_v17 }
  0x48   :  { %2665 = vmatprep.subr.bf16.mxu1 %v3425_v21 }
  0xfc   :  { %v517_v23 = vpop.f32.mrb[0].mxu0 }
  0xfd   :  { %v588_v24 = vpop.f32.mrb[0].mxu1  ;;  %v3128_v27 = vadd.f32 %v517_v23, %v3791_v16  ;;  %v519_v31 = vpop.f32.mrb[1].mxu0 }
  0xfe   :  { %v590_v34 = vpop.f32.mrb[1].mxu1  ;;  %v3129_v36 = vadd.f32 %v519_v31, %v3793_v22  ;;  %v3144_v49 = vadd.f32 %v588_v24, %v3800_v44 }
  0xff   :  { %v597_v41 = vmul.f32 0.5, %v3128_v27  ;;  %v3145_v43 = vadd.f32 %v590_v34, %v3796_v32 }
 0x100   :  { %v598_v42 = vmul.f32 0.5, %v3129_v36  ;;  %v599_v50 = vmul.f32 0.5, %v3144_v49 }
 0x101   :  { %3194 = vtanh.f32 %v597_v41 }
 0x102   :  { %3196 = vtanh.f32 %v598_v42 }
 0x103   :  { %3198 = vtanh.f32 %v3145_v43 }
 0x104   :  { %3200 = vtanh.f32 %v599_v50 }
 0x10b   :  { %v3195_v51 = vpop.eup %3194 }
 0x10c   :  { %v603_v52 = vmul.f32 0.5, %v3195_v51  ;;  %v3197_v55 = vpop.eup %3196 }
 0x10d   :  { %v604_v59 = vmul.f32 0.5, %v3197_v55  ;;  %v3199_v60 = vpop.eup %3198 }
 0x10e   :  { %v606_v58 = vadd.f32 0.5, %v603_v52  ;;  %v3201_v13 = vpop.eup %3200 }
 0x10f   :  { %v607_v2 = vadd.f32 0.5, %v604_v59  ;;  %v605_v14 = vmul.f32 0.5, %v3201_v13 }
 0x110   :  { %v611_v8 = vmul.f32 %v3199_v60, %v606_v58 }
 0x111   :  { %v610_v9 = vmul.f32 %v607_v2, %v443_v63  ;;  %v608_v15 = vadd.f32 0.5, %v605_v14 }
 0x113   :  { %v3806_v10 = vadd.f32 %v611_v8, %v610_v9 }
 0x115   :  { %3202 = vtanh.f32 %v3806_v10 }
 0x11f   :  { %v3203_v18 = vpop.eup %3202 }
 0x120   :  { %v3809_v23 = vmul.f32 %v3203_v18, %v608_v15 }
 0x122   :  { %688 = vmatmul.mubr.f32.vlgmr.msra.gmra.mrb[2].mxu0 %v3809_v23  ;;  %759 = vmatmul.mubr.f32.vlgmr.msra.gmra.mrb[2].mxu1 %v3809_v23 }
 0x123   :  { %2635 = vmatpush1.bf16.msra.mxu0 %v3437_v25  ;;  %2667 = vmatpush1.bf16.msra.mxu1 %v3439_v26 }
 0x124   :  { %2637 = vmatprep.subr.bf16.mxu0 %v3448_v29  ;;  %2669 = vmatprep.subr.bf16.mxu1 %v3461_v33 }
 0x125   :  { %859 = vmatprep.mubr.f32.mxu0 %v3291_v3  ;;  %930 = vmatprep.mubr.f32.mxu1 %v3291_v3 }
 0x127   :  { %2639 = vmatpush1.bf16.msra.mxu0 %v3477_v38  ;;  %2671 = vmatpush1.bf16.msra.mxu1 %v3479_v39 }
 0x128   :  { %2641 = vmatprep.subr.bf16.mxu0 %v3500_v45  ;;  %2673 = vmatprep.subr.bf16.mxu1 %v3502_v46 }
 0x12b   :  { %2643 = vmatpush1.bf16.msra.mxu0 %v3526_v53  ;;  %2675 = vmatpush1.bf16.msra.mxu1 %v3528_v54 }
 0x12c   :  { %2645 = vmatprep.subr.bf16.mxu0 %v3552_v61  ;;  %2677 = vmatprep.subr.bf16.mxu1 %v3554_v62 }
 0x12f   :  { %2647 = vmatpush1.bf16.msra.mxu0 %v3575_v5  ;;  %2679 = vmatpush1.bf16.msra.mxu1 %v3577_v6 }
 0x130   :  { %2649 = vmatprep.subr.bf16.mxu0 %v3595_v11  ;;  %2681 = vmatprep.subr.bf16.mxu1 %v3597_v12 }
 0x133   :  { %2651 = vmatpush1.bf16.msra.mxu0 %v3618_v19  ;;  %2683 = vmatpush1.bf16.msra.mxu1 %v3620_v20 }
 0x134   :  { %2653 = vmatprep.subr.bf16.mxu0 %v3638_v28  ;;  %2685 = vmatprep.subr.bf16.mxu1 %v3640_v30 }
 0x137   :  { %2655 = vmatpush1.bf16.msra.mxu0 %v3661_v37  ;;  %2687 = vmatpush1.bf16.msra.mxu1 %v3663_v40 }
 0x138   :  { %2657 = vmatprep.subr.bf16.mxu0 %v3681_v47  ;;  %2689 = vmatprep.subr.bf16.mxu1 %v3683_v48 }
 0x13b   :  { %2659 = vmatpush1.bf16.msra.mxu0 %v3704_v56  ;;  %2691 = vmatpush1.bf16.msra.mxu1 %v3706_v57 }
 0x13c   :  { %2661 = vmatprep.subr.bf16.mxu0 %v3724_v0  ;;  %2693 = vmatprep.subr.bf16.mxu1 %v3726_v1 }
 0x13f   :  { %2663 = vmatpush1.bf16.msra.mxu0 %v3735_v4  ;;  %2695 = vmatpush1.bf16.msra.mxu1 %v3737_v7 }
 0x140   :  { %2697 = vmatprep.subr.bf16.mxu0 %v3410_v17  ;;  %2729 = vmatprep.subr.bf16.mxu1 %v3425_v21 }
 0x1f5   :  { %v689_v24 = vpop.f32.mrb[2].mxu0  ;;  %v760_v27 = vpop.f32.mrb[2].mxu1 }
 0x1f6   :  { %v3130_v31 = vadd.f32 %v689_v24, %v3791_v16  ;;  %v691_v34 = vpop.f32.mrb[3].mxu0  ;;  %v762_v35 = vpop.f32.mrb[3].mxu1  ;;  %v3146_v49 = vadd.f32 %v760_v27, %v3800_v44 }
 0x1f7   :  { %v3131_v36 = vadd.f32 %v691_v34, %v3793_v22  ;;  %v3147_v43 = vadd.f32 %v762_v35, %v3796_v32 }
 0x1f8   :  { %v769_v41 = vmul.f32 0.5, %v3130_v31  ;;  %v771_v50 = vmul.f32 0.5, %v3146_v49 }
 0x1f9   :  { %v770_v42 = vmul.f32 0.5, %v3131_v36 }
 0x1fa   :  { %3204 = vtanh.f32 %v769_v41 }
 0x1fb   :  { %3206 = vtanh.f32 %v770_v42 }
 0x1fc   :  { %3208 = vtanh.f32 %v3147_v43 }
 0x1fd   :  { %3210 = vtanh.f32 %v771_v50 }
 0x204   :  { %v3205_v51 = vpop.eup %3204 }
 0x205   :  { %v775_v52 = vmul.f32 0.5, %v3205_v51  ;;  %v3207_v55 = vpop.eup %3206 }
 0x206   :  { %v776_v59 = vmul.f32 0.5, %v3207_v55  ;;  %v3209_v60 = vpop.eup %3208 }
 0x207   :  { %v778_v58 = vadd.f32 0.5, %v775_v52  ;;  %v3211_v13 = vpop.eup %3210 }
 0x208   :  { %v779_v63 = vadd.f32 0.5, %v776_v59  ;;  %v777_v14 = vmul.f32 0.5, %v3211_v13 }
 0x209   :  { %v783_v2 = vmul.f32 %v3209_v60, %v778_v58 }
 0x20a   :  { %v782_v8 = vmul.f32 %v779_v63, %v3806_v10  ;;  %v780_v15 = vadd.f32 0.5, %v777_v14 }
 0x20c   :  { %v3852_v9 = vadd.f32 %v783_v2, %v782_v8 }
 0x20e   :  { %3212 = vtanh.f32 %v3852_v9 }
 0x218   :  { %v3213_v18 = vpop.eup %3212 }
 0x219   :  { %v3855_v24 = vmul.f32 %v3213_v18, %v780_v15 }
 0x21b   :  { %860 = vmatmul.mubr.f32.vlgmr.msra.gmra.mrb[4].mxu0 %v3855_v24  ;;  %931 = vmatmul.mubr.f32.vlgmr.msra.gmra.mrb[4].mxu1 %v3855_v24 }
 0x21c   :  { %2699 = vmatpush1.bf16.msra.mxu0 %v3437_v25  ;;  %2731 = vmatpush1.bf16.msra.mxu1 %v3439_v26 }
 0x21d   :  { %2701 = vmatprep.subr.bf16.mxu0 %v3448_v29  ;;  %2733 = vmatprep.subr.bf16.mxu1 %v3461_v33 }
 0x21e   :  { %1031 = vmatprep.mubr.f32.mxu0 %v3291_v3  ;;  %1102 = vmatprep.mubr.f32.mxu1 %v3291_v3 }
 0x220   :  { %2703 = vmatpush1.bf16.msra.mxu0 %v3477_v38  ;;  %2735 = vmatpush1.bf16.msra.mxu1 %v3479_v39 }
 0x221   :  { %2705 = vmatprep.subr.bf16.mxu0 %v3500_v45  ;;  %2737 = vmatprep.subr.bf16.mxu1 %v3502_v46 }
 0x224   :  { %2707 = vmatpush1.bf16.msra.mxu0 %v3526_v53  ;;  %2739 = vmatpush1.bf16.msra.mxu1 %v3528_v54 }
 0x225   :  { %2709 = vmatprep.subr.bf16.mxu0 %v3552_v61  ;;  %2741 = vmatprep.subr.bf16.mxu1 %v3554_v62 }
 0x228   :  { %2711 = vmatpush1.bf16.msra.mxu0 %v3575_v5  ;;  %2743 = vmatpush1.bf16.msra.mxu1 %v3577_v6 }
 0x229   :  { %2713 = vmatprep.subr.bf16.mxu0 %v3595_v11  ;;  %2745 = vmatprep.subr.bf16.mxu1 %v3597_v12 }
 0x22c   :  { %2715 = vmatpush1.bf16.msra.mxu0 %v3618_v19  ;;  %2747 = vmatpush1.bf16.msra.mxu1 %v3620_v20 }
 0x22d   :  { %2717 = vmatprep.subr.bf16.mxu0 %v3638_v28  ;;  %2749 = vmatprep.subr.bf16.mxu1 %v3640_v30 }
 0x230   :  { %2719 = vmatpush1.bf16.msra.mxu0 %v3661_v37  ;;  %2751 = vmatpush1.bf16.msra.mxu1 %v3663_v40 }
 0x231   :  { %2721 = vmatprep.subr.bf16.mxu0 %v3681_v47  ;;  %2753 = vmatprep.subr.bf16.mxu1 %v3683_v48 }
 0x234   :  { %2723 = vmatpush1.bf16.msra.mxu0 %v3704_v56  ;;  %2755 = vmatpush1.bf16.msra.mxu1 %v3706_v57 }
 0x235   :  { %2725 = vmatprep.subr.bf16.mxu0 %v3724_v0  ;;  %2757 = vmatprep.subr.bf16.mxu1 %v3726_v1 }
 0x238   :  { %2727 = vmatpush1.bf16.msra.mxu0 %v3735_v4  ;;  %2759 = vmatpush1.bf16.msra.mxu1 %v3737_v7 }
 0x239   :  { %2761 = vmatprep.subr.bf16.mxu0 %v3410_v17  ;;  %2793 = vmatprep.subr.bf16.mxu1 %v3425_v21 }
 0x2ee   :  { %v861_v10 = vpop.f32.mrb[4].mxu0  ;;  %v932_v27 = vpop.f32.mrb[4].mxu1 }
 0x2ef   :  { %v3132_v31 = vadd.f32 %v861_v10, %v3791_v16  ;;  %v863_v34 = vpop.f32.mrb[5].mxu0  ;;  %v934_v35 = vpop.f32.mrb[5].mxu1  ;;  %v3148_v49 = vadd.f32 %v932_v27, %v3800_v44 }
 0x2f0   :  { %v3133_v36 = vadd.f32 %v863_v34, %v3793_v22  ;;  %v3149_v43 = vadd.f32 %v934_v35, %v3796_v32 }
 0x2f1   :  { %v941_v41 = vmul.f32 0.5, %v3132_v31  ;;  %v943_v50 = vmul.f32 0.5, %v3148_v49 }
 0x2f2   :  { %v942_v42 = vmul.f32 0.5, %v3133_v36 }
 0x2f3   :  { %3214 = vtanh.f32 %v941_v41 }
 0x2f4   :  { %3216 = vtanh.f32 %v942_v42 }
 0x2f5   :  { %3218 = vtanh.f32 %v3149_v43 }
 0x2f6   :  { %3220 = vtanh.f32 %v943_v50 }
 0x2fd   :  { %v3215_v51 = vpop.eup %3214 }
 0x2fe   :  { %v947_v52 = vmul.f32 0.5, %v3215_v51  ;;  %v3217_v55 = vpop.eup %3216 }
 0x2ff   :  { %v948_v59 = vmul.f32 0.5, %v3217_v55  ;;  %v3219_v60 = vpop.eup %3218 }
 0x300   :  { %v950_v58 = vadd.f32 0.5, %v947_v52  ;;  %v3221_v14 = vpop.eup %3220 }
 0x301   :  { %v951_v63 = vadd.f32 0.5, %v948_v59  ;;  %v949_v15 = vmul.f32 0.5, %v3221_v14 }
 0x302   :  { %v955_v2 = vmul.f32 %v3219_v60, %v950_v58 }
 0x303   :  { %v954_v8 = vmul.f32 %v951_v63, %v3852_v9  ;;  %v952_v18 = vadd.f32 0.5, %v949_v15 }
 0x305   :  { %v3898_v13 = vadd.f32 %v955_v2, %v954_v8 }
 0x307   :  { %3222 = vtanh.f32 %v3898_v13 }
 0x311   :  { %v3223_v10 = vpop.eup %3222 }
 0x312   :  { %v3901_v27 = vmul.f32 %v3223_v10, %v952_v18 }
 0x314   :  { %1032 = vmatmul.mubr.f32.vlgmr.msra.gmra.mrb[6].mxu0 %v3901_v27  ;;  %1103 = vmatmul.mubr.f32.vlgmr.msra.gmra.mrb[6].mxu1 %v3901_v27 }
 0x315   :  { %2763 = vmatpush1.bf16.msra.mxu0 %v3437_v25  ;;  %2795 = vmatpush1.bf16.msra.mxu1 %v3439_v26 }
 0x316   :  { %2765 = vmatprep.subr.bf16.mxu0 %v3448_v29  ;;  %2797 = vmatprep.subr.bf16.mxu1 %v3461_v33 }
 0x317   :  { %1203 = vmatprep.mubr.f32.mxu0 %v3291_v3  ;;  %1274 = vmatprep.mubr.f32.mxu1 %v3291_v3 }
 0x319   :  { %2767 = vmatpush1.bf16.msra.mxu0 %v3477_v38  ;;  %2799 = vmatpush1.bf16.msra.mxu1 %v3479_v39 }
 0x31a   :  { %2769 = vmatprep.subr.bf16.mxu0 %v3500_v45  ;;  %2801 = vmatprep.subr.bf16.mxu1 %v3502_v46 }
 0x31d   :  { %2771 = vmatpush1.bf16.msra.mxu0 %v3526_v53  ;;  %2803 = vmatpush1.bf16.msra.mxu1 %v3528_v54 }
 0x31e   :  { %2773 = vmatprep.subr.bf16.mxu0 %v3552_v61  ;;  %2805 = vmatprep.subr.bf16.mxu1 %v3554_v62 }
 0x321   :  { %2775 = vmatpush1.bf16.msra.mxu0 %v3575_v5  ;;  %2807 = vmatpush1.bf16.msra.mxu1 %v3577_v6 }
 0x322   :  { %2777 = vmatprep.subr.bf16.mxu0 %v3595_v11  ;;  %2809 = vmatprep.subr.bf16.mxu1 %v3597_v12 }
 0x325   :  { %2779 = vmatpush1.bf16.msra.mxu0 %v3618_v19  ;;  %2811 = vmatpush1.bf16.msra.mxu1 %v3620_v20 }
 0x326   :  { %2781 = vmatprep.subr.bf16.mxu0 %v3638_v28  ;;  %2813 = vmatprep.subr.bf16.mxu1 %v3640_v30 }
 0x329   :  { %2783 = vmatpush1.bf16.msra.mxu0 %v3661_v37  ;;  %2815 = vmatpush1.bf16.msra.mxu1 %v3663_v40 }
 0x32a   :  { %2785 = vmatprep.subr.bf16.mxu0 %v3681_v47  ;;  %2817 = vmatprep.subr.bf16.mxu1 %v3683_v48 }
 0x32d   :  { %2787 = vmatpush1.bf16.msra.mxu0 %v3704_v56  ;;  %2819 = vmatpush1.bf16.msra.mxu1 %v3706_v57 }
 0x32e   :  { %2789 = vmatprep.subr.bf16.mxu0 %v3724_v0  ;;  %2821 = vmatprep.subr.bf16.mxu1 %v3726_v1 }
 0x331   :  { %2791 = vmatpush1.bf16.msra.mxu0 %v3735_v4  ;;  %2823 = vmatpush1.bf16.msra.mxu1 %v3737_v7 }
 0x332   :  { %2825 = vmatprep.subr.bf16.mxu0 %v3410_v17  ;;  %2857 = vmatprep.subr.bf16.mxu1 %v3425_v21 }
 0x3e7   :  { %v1033_v9 = vpop.f32.mrb[6].mxu0  ;;  %v1104_v31 = vpop.f32.mrb[6].mxu1 }
 0x3e8   :  { %v3134_v34 = vadd.f32 %v1033_v9, %v3791_v16  ;;  %v1035_v35 = vpop.f32.mrb[7].mxu0  ;;  %v1106_v36 = vpop.f32.mrb[7].mxu1  ;;  %v3150_v50 = vadd.f32 %v1104_v31, %v3800_v44 }
 0x3e9   :  { %v3135_v41 = vadd.f32 %v1035_v35, %v3793_v22  ;;  %v3151_v49 = vadd.f32 %v1106_v36, %v3796_v32 }
 0x3ea   :  { %v1113_v42 = vmul.f32 0.5, %v3134_v34  ;;  %v1115_v51 = vmul.f32 0.5, %v3150_v50 }
 0x3eb   :  { %v1114_v43 = vmul.f32 0.5, %v3135_v41 }
 0x3ec   :  { %3224 = vtanh.f32 %v1113_v42 }
 0x3ed   :  { %3226 = vtanh.f32 %v1114_v43 }
 0x3ee   :  { %3228 = vtanh.f32 %v3151_v49 }
 0x3ef   :  { %3230 = vtanh.f32 %v1115_v51 }
 0x3f6   :  { %v3225_v52 = vpop.eup %3224 }
 0x3f7   :  { %v1119_v55 = vmul.f32 0.5, %v3225_v52  ;;  %v3227_v58 = vpop.eup %3226 }
 0x3f8   :  { %v1120_v60 = vmul.f32 0.5, %v3227_v58  ;;  %v3229_v63 = vpop.eup %3228 }
 0x3f9   :  { %v1122_v59 = vadd.f32 0.5, %v1119_v55  ;;  %v3231_v18 = vpop.eup %3230 }
 0x3fa   :  { %v1123_v2 = vadd.f32 0.5, %v1120_v60  ;;  %v1121_v10 = vmul.f32 0.5, %v3231_v18 }
 0x3fb   :  { %v1127_v8 = vmul.f32 %v3229_v63, %v1122_v59 }
 0x3fc   :  { %v1126_v14 = vmul.f32 %v1123_v2, %v3898_v13  ;;  %v1124_v9 = vadd.f32 0.5, %v1121_v10 }
 0x3fe   :  { %v3944_v15 = vadd.f32 %v1127_v8, %v1126_v14 }
 0x400   :  { %3232 = vtanh.f32 %v3944_v15 }
 0x40a   :  { %v3233_v31 = vpop.eup %3232 }
 0x40b   :  { %v3947_v34 = vmul.f32 %v3233_v31, %v1124_v9 }
 0x40d   :  { %1204 = vmatmul.mubr.f32.vlgmr.msra.gmra.mrb[8].mxu0 %v3947_v34  ;;  %1275 = vmatmul.mubr.f32.vlgmr.msra.gmra.mrb[8].mxu1 %v3947_v34 }
 0x40e   :  { %2827 = vmatpush1.bf16.msra.mxu0 %v3437_v25  ;;  %2859 = vmatpush1.bf16.msra.mxu1 %v3439_v26 }
 0x40f   :  { %2829 = vmatprep.subr.bf16.mxu0 %v3448_v29  ;;  %2861 = vmatprep.subr.bf16.mxu1 %v3461_v33 }
 0x410   :  { %1375 = vmatprep.mubr.f32.mxu0 %v3291_v3  ;;  %1446 = vmatprep.mubr.f32.mxu1 %v3291_v3 }
 0x412   :  { %2831 = vmatpush1.bf16.msra.mxu0 %v3477_v38  ;;  %2863 = vmatpush1.bf16.msra.mxu1 %v3479_v39 }
 0x413   :  { %2833 = vmatprep.subr.bf16.mxu0 %v3500_v45  ;;  %2865 = vmatprep.subr.bf16.mxu1 %v3502_v46 }
 0x416   :  { %2835 = vmatpush1.bf16.msra.mxu0 %v3526_v53  ;;  %2867 = vmatpush1.bf16.msra.mxu1 %v3528_v54 }
 0x417   :  { %2837 = vmatprep.subr.bf16.mxu0 %v3552_v61  ;;  %2869 = vmatprep.subr.bf16.mxu1 %v3554_v62 }
 0x41a   :  { %2839 = vmatpush1.bf16.msra.mxu0 %v3575_v5  ;;  %2871 = vmatpush1.bf16.msra.mxu1 %v3577_v6 }
 0x41b   :  { %2841 = vmatprep.subr.bf16.mxu0 %v3595_v11  ;;  %2873 = vmatprep.subr.bf16.mxu1 %v3597_v12 }
 0x41e   :  { %2843 = vmatpush1.bf16.msra.mxu0 %v3618_v19  ;;  %2875 = vmatpush1.bf16.msra.mxu1 %v3620_v20 }
 0x41f   :  { %2845 = vmatprep.subr.bf16.mxu0 %v3638_v28  ;;  %2877 = vmatprep.subr.bf16.mxu1 %v3640_v30 }
 0x422   :  { %2847 = vmatpush1.bf16.msra.mxu0 %v3661_v37  ;;  %2879 = vmatpush1.bf16.msra.mxu1 %v3663_v40 }
 0x423   :  { %2849 = vmatprep.subr.bf16.mxu0 %v3681_v47  ;;  %2881 = vmatprep.subr.bf16.mxu1 %v3683_v48 }
 0x426   :  { %2851 = vmatpush1.bf16.msra.mxu0 %v3704_v56  ;;  %2883 = vmatpush1.bf16.msra.mxu1 %v3706_v57 }
 0x427   :  { %2853 = vmatprep.subr.bf16.mxu0 %v3724_v0  ;;  %2885 = vmatprep.subr.bf16.mxu1 %v3726_v1 }
 0x42a   :  { %2855 = vmatpush1.bf16.msra.mxu0 %v3735_v4  ;;  %2887 = vmatpush1.bf16.msra.mxu1 %v3737_v7 }
 0x42b   :  { %2889 = vmatprep.subr.bf16.mxu0 %v3410_v17  ;;  %2921 = vmatprep.subr.bf16.mxu1 %v3425_v21 }
 0x4e0   :  { %v1205_v13 = vpop.f32.mrb[8].mxu0  ;;  %v1276_v35 = vpop.f32.mrb[8].mxu1 }
 0x4e1   :  { %v3136_v36 = vadd.f32 %v1205_v13, %v3791_v16  ;;  %v1207_v41 = vpop.f32.mrb[9].mxu0  ;;  %v1278_v42 = vpop.f32.mrb[9].mxu1  ;;  %v3152_v52 = vadd.f32 %v1276_v35, %v3800_v44 }
 0x4e2   :  { %v3137_v43 = vadd.f32 %v1207_v41, %v3793_v22  ;;  %v3153_v51 = vadd.f32 %v1278_v42, %v3796_v32 }
 0x4e3   :  { %v1285_v49 = vmul.f32 0.5, %v3136_v36  ;;  %v1287_v55 = vmul.f32 0.5, %v3152_v52 }
 0x4e4   :  { %v1286_v50 = vmul.f32 0.5, %v3137_v43 }
 0x4e5   :  { %3234 = vtanh.f32 %v1285_v49 }
 0x4e6   :  { %3236 = vtanh.f32 %v1286_v50 }
 0x4e7   :  { %3238 = vtanh.f32 %v3153_v51 }
 0x4e8   :  { %3240 = vtanh.f32 %v1287_v55 }
 0x4ef   :  { %v3235_v58 = vpop.eup %3234 }
 0x4f0   :  { %v1291_v59 = vmul.f32 0.5, %v3235_v58  ;;  %v3237_v60 = vpop.eup %3236 }
 0x4f1   :  { %v1292_v2 = vmul.f32 0.5, %v3237_v60  ;;  %v3239_v8 = vpop.eup %3238 }
 0x4f2   :  { %v1294_v63 = vadd.f32 0.5, %v1291_v59  ;;  %v3241_v31 = vpop.eup %3240 }
 0x4f3   :  { %v1295_v14 = vadd.f32 0.5, %v1292_v2  ;;  %v1293_v13 = vmul.f32 0.5, %v3241_v31 }
 0x4f4   :  { %v1299_v18 = vmul.f32 %v3239_v8, %v1294_v63 }
 0x4f5   :  { %v1298_v10 = vmul.f32 %v1295_v14, %v3944_v15  ;;  %v1296_v36 = vadd.f32 0.5, %v1293_v13 }
 0x4f7   :  { %v3990_v9 = vadd.f32 %v1299_v18, %v1298_v10 }
 0x4f9   :  { %3242 = vtanh.f32 %v3990_v9 }
 0x503   :  { %v3243_v35 = vpop.eup %3242 }
 0x504   :  { %v3993_v41 = vmul.f32 %v3243_v35, %v1296_v36 }
 0x506   :  { %1376 = vmatmul.mubr.f32.vlgmr.msra.gmra.mrb[10].mxu0 %v3993_v41  ;;  %1447 = vmatmul.mubr.f32.vlgmr.msra.gmra.mrb[10].mxu1 %v3993_v41 }
 0x507   :  { %2891 = vmatpush1.bf16.msra.mxu0 %v3437_v25  ;;  %2923 = vmatpush1.bf16.msra.mxu1 %v3439_v26 }
 0x508   :  { %2893 = vmatprep.subr.bf16.mxu0 %v3448_v29  ;;  %2925 = vmatprep.subr.bf16.mxu1 %v3461_v33 }
 0x509   :  { %1547 = vmatprep.mubr.f32.mxu0 %v3291_v3  ;;  %1618 = vmatprep.mubr.f32.mxu1 %v3291_v3 }
 0x50b   :  { %2895 = vmatpush1.bf16.msra.mxu0 %v3477_v38  ;;  %2927 = vmatpush1.bf16.msra.mxu1 %v3479_v39 }
 0x50c   :  { %2897 = vmatprep.subr.bf16.mxu0 %v3500_v45  ;;  %2929 = vmatprep.subr.bf16.mxu1 %v3502_v46 }
 0x50f   :  { %2899 = vmatpush1.bf16.msra.mxu0 %v3526_v53  ;;  %2931 = vmatpush1.bf16.msra.mxu1 %v3528_v54 }
 0x510   :  { %2901 = vmatprep.subr.bf16.mxu0 %v3552_v61  ;;  %2933 = vmatprep.subr.bf16.mxu1 %v3554_v62 }
 0x513   :  { %2903 = vmatpush1.bf16.msra.mxu0 %v3575_v5  ;;  %2935 = vmatpush1.bf16.msra.mxu1 %v3577_v6 }
 0x514   :  { %2905 = vmatprep.subr.bf16.mxu0 %v3595_v11  ;;  %2937 = vmatprep.subr.bf16.mxu1 %v3597_v12 }
 0x517   :  { %2907 = vmatpush1.bf16.msra.mxu0 %v3618_v19  ;;  %2939 = vmatpush1.bf16.msra.mxu1 %v3620_v20 }
 0x518   :  { %2909 = vmatprep.subr.bf16.mxu0 %v3638_v28  ;;  %2941 = vmatprep.subr.bf16.mxu1 %v3640_v30 }
 0x51b   :  { %2911 = vmatpush1.bf16.msra.mxu0 %v3661_v37  ;;  %2943 = vmatpush1.bf16.msra.mxu1 %v3663_v40 }
 0x51c   :  { %2913 = vmatprep.subr.bf16.mxu0 %v3681_v47  ;;  %2945 = vmatprep.subr.bf16.mxu1 %v3683_v48 }
 0x51f   :  { %2915 = vmatpush1.bf16.msra.mxu0 %v3704_v56  ;;  %2947 = vmatpush1.bf16.msra.mxu1 %v3706_v57 }
 0x520   :  { %2917 = vmatprep.subr.bf16.mxu0 %v3724_v0  ;;  %2949 = vmatprep.subr.bf16.mxu1 %v3726_v1 }
 0x523   :  { %2919 = vmatpush1.bf16.msra.mxu0 %v3735_v4  ;;  %2951 = vmatpush1.bf16.msra.mxu1 %v3737_v7 }
 0x524   :  { %2953 = vmatprep.subr.bf16.mxu0 %v3410_v17  ;;  %2985 = vmatprep.subr.bf16.mxu1 %v3425_v21 }
 0x5d9   :  { %v1377_v15 = vpop.f32.mrb[10].mxu0  ;;  %v1448_v42 = vpop.f32.mrb[10].mxu1 }
 0x5da   :  { %v3138_v43 = vadd.f32 %v1377_v15, %v3791_v16  ;;  %v1379_v49 = vpop.f32.mrb[11].mxu0  ;;  %v1450_v50 = vpop.f32.mrb[11].mxu1  ;;  %v3154_v59 = vadd.f32 %v1448_v42, %v3800_v44 }
 0x5db   :  { %v3139_v51 = vadd.f32 %v1379_v49, %v3793_v22  ;;  %v3155_v58 = vadd.f32 %v1450_v50, %v3796_v32  ;;  %v1834_v49 = vld [vmem:[%s4325_s6 + $0x20] sm:$0xff]  ;;  %v1835_v50 = vld [vmem:[%s4325_s6 + $0x28] sm:$0xff] }
 0x5dc   :  { %v1457_v52 = vmul.f32 0.5, %v3138_v43  ;;  %v1459_v17 = vmul.f32 0.5, %v3154_v59  ;;  %v1838_v59 = vld [vmem:[%s4325_s6 + $0x40] sm:$0xff] }
 0x5dd   :  { %v1458_v55 = vmul.f32 0.5, %v3139_v51  ;;  %v3024_v51 = vpack.c.bf16 %v1835_v50, %v1834_v49  ;;  %v2114_v50 = vld [vmem:[%s4327_s10 + $0x60] sm:$0xff] }
 0x5de   :  { %3244 = vtanh.f32 %v1457_v52  ;;  %v1836_v52 = vld [vmem:[%s4325_s6 + $0x30] sm:$0xff] }
 0x5df   :  { %3246 = vtanh.f32 %v1458_v55  ;;  %v1837_v55 = vld [vmem:[%s4325_s6 + $0x38] sm:$0xff] }
 0x5e0   :  { %3248 = vtanh.f32 %v3155_v58  ;;  %v3028_v58 = vpack.c.bf16 %v1837_v55, %v1836_v52 }
 0x5e1   :  { %3250 = vtanh.f32 %v1459_v17 }
 0x5e8   :  { %v3245_v60 = vpop.eup %3244 }
 0x5e9   :  { %v1463_v21 = vmul.f32 0.5, %v3245_v60  ;;  %v3247_v63 = vpop.eup %3246  ;;  %v1840_v60 = vld [vmem:[%s4325_s6 + $0x50] sm:$0xff] }
 0x5ea   :  { %v1464_v8 = vmul.f32 0.5, %v3247_v63  ;;  %v3249_v14 = vpop.eup %3248 }
 0x5eb   :  { %v1466_v2 = vadd.f32 0.5, %v1463_v21  ;;  %v3251_v36 = vpop.eup %3250  ;;  %v1841_v21 = vld [vmem:[%s4325_s6 + $0x58] sm:$0xff] }
 0x5ec   :  { %v1467_v18 = vadd.f32 0.5, %v1464_v8  ;;  %v1465_v35 = vmul.f32 0.5, %v3251_v36  ;;  %v3036_v63 = vpack.c.bf16 %v1841_v21, %v1840_v60  ;;  %v1843_v8 = vld [vmem:[%s4325_s6 + $0x68] sm:$0xff] }
 0x5ed   :  { %v1471_v10 = vmul.f32 %v3249_v14, %v1466_v2  ;;  %v1842_v2 = vld [vmem:[%s4325_s6 + $0x60] sm:$0xff]  ;;  %v1967_v36 = vld [vmem:[%s4326_s8 + $0x8] sm:$0xff] }
 0x5ee   :  { %v1470_v31 = vmul.f32 %v1467_v18, %v3990_v9  ;;  %v1468_v15 = vadd.f32 0.5, %v1465_v35  ;;  %v3040_v14 = vpack.c.bf16 %v1843_v8, %v1842_v2  ;;  %v1844_v18 = vld [vmem:[%s4325_s6 + $0x70] sm:$0xff] }
 0x5f0   :  { %v4036_v13 = vadd.f32 %v1471_v10, %v1470_v31  ;;  %v1845_v10 = vld [vmem:[%s4325_s6 + $0x78] sm:$0xff] }
 0x5f1   :  { %v3044_v31 = vpack.c.bf16 %v1845_v10, %v1844_v18 }
 0x5f2   :  { %3252 = vtanh.f32 %v4036_v13 }
 0x5fc   :  { %v3253_v42 = vpop.eup %3252 }
 0x5fd   :  { %v4039_v43 = vmul.f32 %v3253_v42, %v1468_v15  ;;  %v1971_v15 = vld [vmem:[%s4326_s8 + $0x28] sm:$0xff] }
 0x5ff   :  { %1548 = vmatmul.mubr.f32.vlgmr.msra.gmra.mrb[12].mxu0 %v4039_v43  ;;  %1619 = vmatmul.mubr.f32.vlgmr.msra.gmra.mrb[12].mxu1 %v4039_v43 }
 0x600   :  { %2955 = vmatpush1.bf16.msra.mxu0 %v3437_v25  ;;  %2987 = vmatpush1.bf16.msra.mxu1 %v3439_v26  ;;  %v1831_v25 = vld [vmem:[%s4325_s6 + $0x8] sm:$0xff] }
 0x601   :  { %2957 = vmatprep.subr.bf16.mxu0 %v3448_v29  ;;  %2989 = vmatprep.subr.bf16.mxu1 %v3461_v33 }
 0x602   :  { %1719 = vmatprep.mubr.f32.mxu0 %v3291_v3  ;;  %1790 = vmatprep.mubr.f32.mxu1 %v3291_v3  ;;  %v1830_v3 = vld [vmem:[%s4325_s6] sm:$0xff] }
 0x603   :  { %v3016_v26 = vpack.c.bf16 %v1831_v25, %v1830_v3  ;;  %v1973_v3 = vld [vmem:[%s4326_s8 + $0x38] sm:$0xff] }
 0x604   :  { %2959 = vmatpush1.bf16.msra.mxu0 %v3477_v38  ;;  %2991 = vmatpush1.bf16.msra.mxu1 %v3479_v39 }
 0x605   :  { %2961 = vmatprep.subr.bf16.mxu0 %v3500_v45  ;;  %2993 = vmatprep.subr.bf16.mxu1 %v3502_v46 }
 0x608   :  { %2963 = vmatpush1.bf16.msra.mxu0 %v3526_v53  ;;  %2995 = vmatpush1.bf16.msra.mxu1 %v3528_v54 }
 0x609   :  { %2965 = vmatprep.subr.bf16.mxu0 %v3552_v61  ;;  %2997 = vmatprep.subr.bf16.mxu1 %v3554_v62 }
 0x60c   :  { %2967 = vmatpush1.bf16.msra.mxu0 %v3575_v5  ;;  %2999 = vmatpush1.bf16.msra.mxu1 %v3577_v6 }
 0x60d   :  { %2969 = vmatprep.subr.bf16.mxu0 %v3595_v11  ;;  %3001 = vmatprep.subr.bf16.mxu1 %v3597_v12 }
 0x610   :  { %2971 = vmatpush1.bf16.msra.mxu0 %v3618_v19  ;;  %3003 = vmatpush1.bf16.msra.mxu1 %v3620_v20 }
 0x611   :  { %2973 = vmatprep.subr.bf16.mxu0 %v3638_v28  ;;  %3005 = vmatprep.subr.bf16.mxu1 %v3640_v30 }
 0x614   :  { %2975 = vmatpush1.bf16.msra.mxu0 %v3661_v37  ;;  %3007 = vmatpush1.bf16.msra.mxu1 %v3663_v40 }
 0x615   :  { %2977 = vmatprep.subr.bf16.mxu0 %v3681_v47  ;;  %3009 = vmatprep.subr.bf16.mxu1 %v3683_v48 }
 0x618   :  { %2979 = vmatpush1.bf16.msra.mxu0 %v3704_v56  ;;  %3011 = vmatpush1.bf16.msra.mxu1 %v3706_v57  ;;  %v1832_v57 = vld [vmem:[%s4325_s6 + $0x10] sm:$0xff] }
 0x619   :  { %2981 = vmatprep.subr.bf16.mxu0 %v3724_v0  ;;  %3013 = vmatprep.subr.bf16.mxu1 %v3726_v1  ;;  %v1833_v0 = vld [vmem:[%s4325_s6 + $0x18] sm:$0xff] }
 0x61a   :  { %v3020_v9 = vpack.c.bf16 %v1833_v0, %v1832_v57  ;;  %v2110_v0 = vld [vmem:[%s4327_s10 + $0x40] sm:$0xff] }
 0x61c   :  { %2983 = vmatpush1.bf16.msra.mxu0 %v3735_v4  ;;  %3015 = vmatpush1.bf16.msra.mxu1 %v3737_v7 }
 0x61d   :  { %3017 = vmatprep.subr.bf16.mxu0 %v3016_v26 }
 0x6d2   :  { %v1549_v29 = vpop.f32.mrb[12].mxu0  ;;  %v1620_v33 = vpop.f32.mrb[12].mxu1 }
 0x6d3   :  { %v3140_v38 = vadd.f32 %v1549_v29, %v3791_v16  ;;  %v1551_v39 = vpop.f32.mrb[13].mxu0  ;;  %v1622_v45 = vpop.f32.mrb[13].mxu1  ;;  %v3156_v62 = vadd.f32 %v1620_v33, %v3800_v44  ;;  %v1975_v29 = vld [vmem:[%s4326_s8 + $0x48] sm:$0xff] }
 0x6d4   :  { %v3141_v46 = vadd.f32 %v1551_v39, %v3793_v22  ;;  %v3157_v61 = vadd.f32 %v1622_v45, %v3796_v32  ;;  %v1977_v39 = vld [vmem:[%s4326_s8 + $0x58] sm:$0xff] }
 0x6d5   :  { %v1629_v53 = vmul.f32 0.5, %v3140_v38  ;;  %v1631_v5 = vmul.f32 0.5, %v3156_v62  ;;  %v1976_v38 = vld [vmem:[%s4326_s8 + $0x50] sm:$0xff]  ;;  %v1981_v62 = vld [vmem:[%s4326_s8 + $0x78] sm:$0xff] }
 0x6d6   :  { %v1630_v54 = vmul.f32 0.5, %v3141_v46  ;;  %v3068_v45 = vpack.c.bf16 %v1977_v39, %v1976_v38  ;;  %v1978_v46 = vld [vmem:[%s4326_s8 + $0x60] sm:$0xff] }
 0x6d7   :  { %3254 = vtanh.f32 %v1629_v53  ;;  %v1979_v53 = vld [vmem:[%s4326_s8 + $0x68] sm:$0xff] }
 0x6d8   :  { %3256 = vtanh.f32 %v1630_v54  ;;  %v3072_v54 = vpack.c.bf16 %v1979_v53, %v1978_v46 }
 0x6d9   :  { %3258 = vtanh.f32 %v3157_v61  ;;  %v1980_v61 = vld [vmem:[%s4326_s8 + $0x70] sm:$0xff] }
 0x6da   :  { %3260 = vtanh.f32 %v1631_v5  ;;  %v3076_v5 = vpack.c.bf16 %v1981_v62, %v1980_v61 }
 0x6e1   :  { %v3255_v6 = vpop.eup %3254 }
 0x6e2   :  { %v1635_v11 = vmul.f32 0.5, %v3255_v6  ;;  %v3257_v12 = vpop.eup %3256  ;;  %v2102_v6 = vld [vmem:[%s4327_s10] sm:$0xff] }
 0x6e3   :  { %v1636_v20 = vmul.f32 0.5, %v3257_v12  ;;  %v3259_v28 = vpop.eup %3258  ;;  %v2104_v12 = vld [vmem:[%s4327_s10 + $0x10] sm:$0xff] }
 0x6e4   :  { %v1638_v19 = vadd.f32 0.5, %v1635_v11  ;;  %v3261_v48 = vpop.eup %3260  ;;  %v2103_v11 = vld [vmem:[%s4327_s10 + $0x8] sm:$0xff] }
 0x6e5   :  { %v1639_v30 = vadd.f32 0.5, %v1636_v20  ;;  %v1637_v56 = vmul.f32 0.5, %v3261_v48  ;;  %v2105_v20 = vld [vmem:[%s4327_s10 + $0x18] sm:$0xff]  ;;  %v2108_v48 = vld [vmem:[%s4327_s10 + $0x30] sm:$0xff] }
 0x6e6   :  { %v1643_v37 = vmul.f32 %v3259_v28, %v1638_v19  ;;  %v4194_v19 = vpack.c.bf16 %v2103_v11, %v2102_v6  ;;  %v4199_v28 = vpack.c.bf16 %v2105_v20, %v2104_v12  ;;  %v2116_v12 = vld [vmem:[%s4327_s10 + $0x70] sm:$0xff] }
 0x6e7   :  { %v1642_v40 = vmul.f32 %v1639_v30, %v4036_v13  ;;  %v1640_v1 = vadd.f32 0.5, %v1637_v56  ;;  %v1966_v13 = vld [vmem:[%s4326_s8] sm:$0xff]  ;;  %v2109_v56 = vld [vmem:[%s4327_s10 + $0x38] sm:$0xff] }
 0x6e8   :  { %v3048_v35 = vpack.c.bf16 %v1967_v36, %v1966_v13  ;;  %v2106_v30 = vld [vmem:[%s4327_s10 + $0x20] sm:$0xff]  ;;  %v4221_v57 = vpack.c.bf16 %v2109_v56, %v2108_v48 }
 0x6e9   :  { %v4086_v47 = vadd.f32 %v1643_v37, %v1642_v40  ;;  %v2107_v37 = vld [vmem:[%s4327_s10 + $0x28] sm:$0xff] }
 0x6ea   :  { %3049 = vmatprep.subr.bf16.mxu1 %v3048_v35  ;;  %v4211_v40 = vpack.c.bf16 %v2107_v37, %v2106_v30 }
 0x6eb   :  { %3262 = vtanh.f32 %v4086_v47 }
 0x6f5   :  { %v3263_v4 = vpop.eup %3262 }
 0x6f6   :  { %v1646_v7 = vmul.f32 %v3263_v4, %v1640_v1  ;;  %v2111_v1 = vld [vmem:[%s4327_s10 + $0x48] sm:$0xff] }
 0x6f7   :  { %v4231_v4 = vpack.c.bf16 %v2111_v1, %v2110_v0 }
 0x6f8   :  { %1720 = vmatmul.mubr.f32.vlgmr.msra.gmra.mrb[14].mxu0 %v1646_v7  ;;  %1791 = vmatmul.mubr.f32.vlgmr.msra.gmra.mrb[14].mxu1 %v1646_v7 }
 0x6f9   :  { %3019 = vmatpush3.bf16.msra.mxu0 %v3016_v26  ;;  %2392 = vmatprep.mubr.f32.mxu0 %v3809_v23  ;;  %v1839_v23 = vld [vmem:[%s4325_s6 + $0x48] sm:$0xff]  ;;  %v1974_v26 = vld [vmem:[%s4326_s8 + $0x40] sm:$0xff] }
 0x6fa   :  { %3021 = vmatprep.subr.bf16.mxu0 %v3020_v9  ;;  %v3032_v17 = vpack.c.bf16 %v1839_v23, %v1838_v59  ;;  %3051 = vmatpush3.bf16.msra.mxu1 %v3048_v35  ;;  %v3064_v33 = vpack.c.bf16 %v1975_v29, %v1974_v26 }
 0x6fd   :  { %3023 = vmatpush3.bf16.msra.mxu0 %v3020_v9  ;;  %v2113_v9 = vld [vmem:[%s4327_s10 + $0x58] sm:$0xff] }
 0x6fe   :  { %3025 = vmatprep.subr.bf16.mxu0 %v3024_v51 }
 0x701   :  { %3027 = vmatpush3.bf16.msra.mxu0 %v3024_v51  ;;  %v2115_v51 = vld [vmem:[%s4327_s10 + $0x68] sm:$0xff] }
 0x702   :  { %3029 = vmatprep.subr.bf16.mxu0 %v3028_v58  ;;  %v4251_v52 = vpack.c.bf16 %v2115_v51, %v2114_v50 }
 0x705   :  { %3031 = vmatpush3.bf16.msra.mxu0 %v3028_v58 }
 0x706   :  { %3033 = vmatprep.subr.bf16.mxu0 %v3032_v17 }
 0x709   :  { %3035 = vmatpush3.bf16.msra.mxu0 %v3032_v17 }
 0x70a   :  { %3037 = vmatprep.subr.bf16.mxu0 %v3036_v63 }
 0x70d   :  { %3039 = vmatpush3.bf16.msra.mxu0 %v3036_v63 }
 0x70e   :  { %3041 = vmatprep.subr.bf16.mxu0 %v3040_v14 }
 0x711   :  { %3043 = vmatpush3.bf16.msra.mxu0 %v3040_v14 }
 0x712   :  { %3045 = vmatprep.subr.bf16.mxu0 %v3044_v31 }
 0x715   :  { %3047 = vmatpush3.bf16.msra.mxu0 %v3044_v31 }
 0x716   :  { %3081 = vmatprep.subr.bf16.mxu0 %v4194_v19 }
 0x718   :  { %2393 = vmatmul.mubr.f32.vlgmr.msra.gmra.mrb[16].mxu0 %v3855_v24  ;;  %v1968_v24 = vld [vmem:[%s4326_s8 + $0x10] sm:$0xff] }
 0x719   :  { %2395 = vmatprep.mubr.f32.mxu0 %v3901_v27  ;;  %v1969_v27 = vld [vmem:[%s4326_s8 + $0x18] sm:$0xff]  ;;  %3083 = vmatpush3.bf16.msra.mxu0 %v4194_v19 }
 0x71a   :  { %3085 = vmatprep.subr.bf16.mxu0 %v4199_v28 }
 0x71c   :  { %2396 = vmatmul.mubr.f32.gmra.mrb[18].mxu0 %v3947_v34  ;;  %v3052_v34 = vpack.c.bf16 %v1969_v27, %v1968_v24 }
 0x71d   :  { %2398 = vmatprep.mubr.f32.mxu0 %v3993_v41  ;;  %v1970_v41 = vld [vmem:[%s4326_s8 + $0x20] sm:$0xff]  ;;  %3087 = vmatpush3.bf16.msra.mxu0 %v4199_v28 }
 0x71e   :  { %3053 = vmatprep.subr.bf16.mxu1 %v3052_v34  ;;  %v3056_v42 = vpack.c.bf16 %v1971_v15, %v1970_v41  ;;  %3089 = vmatprep.subr.bf16.mxu0 %v4211_v40 }
 0x71f   :  { %3055 = vmatpush3.bf16.msra.mxu1 %v3052_v34 }
 0x720   :  { %2399 = vmatmul.mubr.f32.gmra.mrb[20].mxu0 %v4039_v43  ;;  %3057 = vmatprep.subr.bf16.mxu1 %v3056_v42  ;;  %v1972_v43 = vld [vmem:[%s4326_s8 + $0x30] sm:$0xff] }
 0x721   :  { %2401 = vmatprep.mubr.f32.mxu0 %v1646_v7  ;;  %v3060_v25 = vpack.c.bf16 %v1973_v3, %v1972_v43  ;;  %3091 = vmatpush3.bf16.msra.mxu0 %v4211_v40  ;;  %v2112_v7 = vld [vmem:[%s4327_s10 + $0x50] sm:$0xff] }
 0x722   :  { %3093 = vmatprep.subr.bf16.mxu0 %v4221_v57  ;;  %v4241_v49 = vpack.c.bf16 %v2113_v9, %v2112_v7 }
 0x723   :  { %3059 = vmatpush3.bf16.msra.mxu1 %v3056_v42 }
 0x724   :  { %3061 = vmatprep.subr.bf16.mxu1 %v3060_v25 }
 0x725   :  { %3095 = vmatpush3.bf16.msra.mxu0 %v4221_v57 }
 0x726   :  { %3097 = vmatprep.subr.bf16.mxu0 %v4231_v4 }
 0x727   :  { %3063 = vmatpush3.bf16.msra.mxu1 %v3060_v25 }
 0x728   :  { %3065 = vmatprep.subr.bf16.mxu1 %v3064_v33 }
 0x729   :  { %3099 = vmatpush3.bf16.msra.mxu0 %v4231_v4 }
 0x72a   :  { %3101 = vmatprep.subr.bf16.mxu0 %v4241_v49 }
 0x72b   :  { %3067 = vmatpush3.bf16.msra.mxu1 %v3064_v33 }
 0x72c   :  { %3069 = vmatprep.subr.bf16.mxu1 %v3068_v45 }
 0x72d   :  { %3103 = vmatpush3.bf16.msra.mxu0 %v4241_v49 }
 0x72e   :  { %3105 = vmatprep.subr.bf16.mxu0 %v4251_v52 }
 0x72f   :  { %3071 = vmatpush3.bf16.msra.mxu1 %v3068_v45 }
 0x730   :  { %3073 = vmatprep.subr.bf16.mxu1 %v3072_v54 }
 0x731   :  { %3107 = vmatpush3.bf16.msra.mxu0 %v4251_v52 }
 0x733   :  { %3075 = vmatpush3.bf16.msra.mxu1 %v3072_v54 }
 0x734   :  { %3077 = vmatprep.subr.bf16.mxu1 %v3076_v5 }
 0x737   :  { %3079 = vmatpush3.bf16.msra.mxu1 %v3076_v5 }
 0x738   :  { %3112 = vmatprep.subr.bf16.mxu1 %v4194_v19 }
 0x7cb   :  { %v1721_v55 = vpop.f32.mrb[14].mxu0  ;;  %v1792_v58 = vpop.f32.mrb[14].mxu1 }
 0x7cc   :  { %v3142_v59 = vadd.f32 %v1721_v55, %v3791_v16  ;;  %v1723_v23 = vpop.f32.mrb[15].mxu0  ;;  %v1794_v17 = vpop.f32.mrb[15].mxu1  ;;  %v3158_v8 = vadd.f32 %v1792_v58, %v3800_v44  ;;  %v2285_v44 = vld [vmem:[%s4329_s7] ss:$0 sm:$0xff] }
 0x7cd   :  { %v3143_v60 = vadd.f32 %v1723_v23, %v3793_v22  ;;  %v3159_v2 = vadd.f32 %v1794_v17, %v3796_v32 }
 0x7ce   :  { %v1801_v21 = vmul.f32 0.5, %v3142_v59  ;;  %v1803_v14 = vmul.f32 0.5, %v3158_v8  ;;  %v2287_v8 = vld [vmem:[%s4332_s11] ss:$0 sm:$0xff] }
 0x7cf   :  { %v1802_v63 = vmul.f32 0.5, %v3143_v60 }
 0x7d0   :  { %3264 = vtanh.f32 %v1801_v21 }
 0x7d1   :  { %3266 = vtanh.f32 %v1802_v63 }
 0x7d2   :  { %3268 = vtanh.f32 %v3159_v2 }
 0x7d3   :  { %3270 = vtanh.f32 %v1803_v14 }
 0x7da   :  { %v3265_v18 = vpop.eup %3264 }
 0x7db   :  { %v1807_v10 = vmul.f32 0.5, %v3265_v18  ;;  %v3267_v31 = vpop.eup %3266 }
 0x7dc   :  { %v1808_v16 = vmul.f32 0.5, %v3267_v31  ;;  %v3269_v36 = vpop.eup %3268 }
 0x7dd   :  { %v1810_v13 = vadd.f32 0.5, %v1807_v10  ;;  %v3271_v32 = vpop.eup %3270 }
 0x7de   :  { %v1811_v35 = vadd.f32 0.5, %v1808_v16  ;;  %v1809_v34 = vmul.f32 0.5, %v3271_v32 }
 0x7df   :  { %v1815_v24 = vmul.f32 %v3269_v36, %v1810_v13 }
 0x7e0   :  { %v1814_v22 = vmul.f32 %v1811_v35, %v4086_v47  ;;  %v1812_v3 = vadd.f32 0.5, %v1809_v34 }
 0x7e2   :  { %v1816_v27 = vadd.f32 %v1815_v24, %v1814_v22 }
 0x7e4   :  { %1821 = vst [vmem:[%s4328_s14] sm:$0xff] %v1816_v27  ;;  %3272 = vtanh.f32 %v1816_v27 }
 0x7eb   :  { %v2394_v41 = vpop.f32.mrb[16].mxu0 }
 0x7ec   :  { %v1925_v15 = vadd.f32 %v2394_v41, %v2285_v44  ;;  %v1919_v42 = vpop.f32.mrb[17].mxu0 }
 0x7ed   :  { %v1920_v43 = vadd.f32 %v2285_v44, %v1919_v42 }
 0x7ee   :  { %v3273_v25 = vpop.eup %3272  ;;  %v1959_v29 = vmax.f32 %v1925_v15, 0.0 }
 0x7ef   :  { %v1958_v26 = vmax.f32 %v1920_v43, 0.0  ;;  %v2397_v47 = vpop.f32.mrb[18].mxu0  ;;  %v1818_v39 = vmul.f32 %v3273_v25, %v1812_v3 }
 0x7f0   :  { %v1935_v33 = vadd.f32 %v2397_v47, %v2285_v44  ;;  %v1929_v38 = vpop.f32.mrb[19].mxu0 }
 0x7f1   :  { %v1930_v45 = vadd.f32 %v2285_v44, %v1929_v38  ;;  %2436 = vmatprep.mubr.f32.mxu1 %v1958_v26  ;;  %1820 = vst [vmem:[%s4330_s13] sm:$0xff] %v1818_v39  ;;  %2402 = vmatmul.mubr.f32.gmra.mrb[22].mxu0 %v1818_v39 }
 0x7f2   :  { %2437 = vmatmul.mubr.f32.vlgmr.msra.gmra.mrb[16].mxu1 %v1959_v29  ;;  %v1961_v54 = vmax.f32 %v1935_v33, 0.0 }
 0x7f3   :  { %v1960_v46 = vmax.f32 %v1930_v45, 0.0  ;;  %v2400_v53 = vpop.f32.mrb[20].mxu0  ;;  %3120 = vmatpush3.bf16.msra.mxu1 %v4194_v19  ;;  %v2117_v19 = vld [vmem:[%s4327_s10 + $0x78] sm:$0xff] }
 0x7f4   :  { %v1945_v61 = vadd.f32 %v2400_v53, %v2285_v44  ;;  %v1939_v62 = vpop.f32.mrb[21].mxu0  ;;  %3113 = vmatprep.subr.bf16.mxu1 %v4199_v28  ;;  %v3108_v20 = vpack.c.bf16 %v2117_v19, %v2116_v12 }
 0x7f5   :  { %v1940_v5 = vadd.f32 %v2285_v44, %v1939_v62  ;;  %2439 = vmatprep.mubr.f32.mxu1 %v1960_v46 }
 0x7f6   :  { %2440 = vmatmul.mubr.f32.gmra.mrb[18].mxu1 %v1961_v54  ;;  %v1963_v11 = vmax.f32 %v1945_v61, 0.0  ;;  %3109 = vmatprep.subr.bf16.mxu0 %v3108_v20 }
 0x7f7   :  { %v1962_v6 = vmax.f32 %v1940_v5, 0.0  ;;  %3121 = vmatpush3.bf16.msra.mxu1 %v4199_v28  ;;  %3111 = vmatpush3.bf16.msra.mxu0 %v3108_v20  ;;  %v2286_v28 = vld [vmem:[%s4331_s9] ss:$0 sm:$0xff] }
 0x7f8   :  { %3114 = vmatprep.subr.bf16.mxu1 %v4211_v40 }
 0x7f9   :  { %2442 = vmatprep.mubr.f32.mxu1 %v1962_v6 }
 0x7fa   :  { %2443 = vmatmul.mubr.f32.gmra.mrb[20].mxu1 %v1963_v11 }
 0x7fb   :  { %3122 = vmatpush3.bf16.msra.mxu1 %v4211_v40 }
 0x7fc   :  { %3115 = vmatprep.subr.bf16.mxu1 %v4221_v57 }
 0x7ff   :  { %3123 = vmatpush3.bf16.msra.mxu1 %v4221_v57 }
 0x800   :  { %3116 = vmatprep.subr.bf16.mxu1 %v4231_v4 }
 0x803   :  { %3124 = vmatpush3.bf16.msra.mxu1 %v4231_v4 }
 0x804   :  { %3117 = vmatprep.subr.bf16.mxu1 %v4241_v49 }
 0x807   :  { %3125 = vmatpush3.bf16.msra.mxu1 %v4241_v49 }
 0x808   :  { %3118 = vmatprep.subr.bf16.mxu1 %v4251_v52 }
 0x80b   :  { %3126 = vmatpush3.bf16.msra.mxu1 %v4251_v52 }
 0x80c   :  { %3119 = vmatprep.subr.bf16.mxu1 %v3108_v20 }
 0x80f   :  { %3127 = vmatpush3.bf16.msra.mxu1 %v3108_v20 }
 0x8c4   :  { %v2403_v30 = vpop.f32.mrb[22].mxu0 }
 0x8c5   :  { %v2438_v37 = vpop.f32.mrb[16].mxu1  ;;  %v1955_v40 = vadd.f32 %v2403_v30, %v2285_v44  ;;  %v1949_v56 = vpop.f32.mrb[23].mxu0 }
 0x8c6   :  { %v2061_v48 = vadd.f32 %v2438_v37, %v2286_v28  ;;  %v2055_v57 = vpop.f32.mrb[17].mxu1  ;;  %v1950_v0 = vadd.f32 %v2285_v44, %v1949_v56 }
 0x8c7   :  { %v2056_v1 = vadd.f32 %v2286_v28, %v2055_v57  ;;  %v1965_v49 = vmax.f32 %v1955_v40, 0.0 }
 0x8c8   :  { %v1964_v4 = vmax.f32 %v1950_v0, 0.0  ;;  %v2095_v50 = vmax.f32 %v2061_v48, 0.0 }
 0x8c9   :  { %v2094_v7 = vmax.f32 %v2056_v1, 0.0  ;;  %v2441_v9 = vpop.f32.mrb[18].mxu1 }
 0x8ca   :  { %v2071_v51 = vadd.f32 %v2441_v9, %v2286_v28  ;;  %v2065_v52 = vpop.f32.mrb[19].mxu1  ;;  %2445 = vmatprep.mubr.f32.mxu1 %v1964_v4 }
 0x8cb   :  { %v2066_v55 = vadd.f32 %v2286_v28, %v2065_v52  ;;  %2480 = vmatprep.mubr.f32.mxu0 %v2094_v7  ;;  %2446 = vmatmul.mubr.f32.gmra.mrb[22].mxu1 %v1965_v49 }
 0x8cc   :  { %2481 = vmatmul.mubr.f32.vlgmr.msra.gmra.mrb[24].mxu0 %v2095_v50  ;;  %v2097_v23 = vmax.f32 %v2071_v51, 0.0 }
 0x8cd   :  { %v2096_v58 = vmax.f32 %v2066_v55, 0.0  ;;  %v2444_v59 = vpop.f32.mrb[20].mxu1 }
 0x8ce   :  { %v2081_v17 = vadd.f32 %v2444_v59, %v2286_v28  ;;  %v2075_v60 = vpop.f32.mrb[21].mxu1 }
 0x8cf   :  { %v2076_v21 = vadd.f32 %v2286_v28, %v2075_v60  ;;  %2483 = vmatprep.mubr.f32.mxu0 %v2096_v58 }
 0x8d0   :  { %2484 = vmatmul.mubr.f32.gmra.mrb[26].mxu0 %v2097_v23  ;;  %v2099_v2 = vmax.f32 %v2081_v17, 0.0 }
 0x8d1   :  { %v2098_v63 = vmax.f32 %v2076_v21, 0.0 }
 0x8d3   :  { %2486 = vmatprep.mubr.f32.mxu1 %v2098_v63 }
 0x8d4   :  { %2487 = vmatmul.mubr.f32.vlgmr.msra.gmra.mrb[24].mxu1 %v2099_v2 }
 0x99e   :  { %v2447_v14 = vpop.f32.mrb[22].mxu1 }
 0x99f   :  { %v2482_v18 = vpop.f32.mrb[24].mxu0  ;;  %v2091_v10 = vadd.f32 %v2447_v14, %v2286_v28  ;;  %v2085_v13 = vpop.f32.mrb[23].mxu1 }
 0x9a0   :  { %v2197_v31 = vadd.f32 %v2482_v18, %v2287_v8  ;;  %v2191_v16 = vpop.f32.mrb[25].mxu0  ;;  %v2086_v36 = vadd.f32 %v2286_v28, %v2085_v13 }
 0x9a1   :  { %v2192_v35 = vadd.f32 %v2287_v8, %v2191_v16  ;;  %v2101_v27 = vmax.f32 %v2091_v10, 0.0 }
 0x9a2   :  { %3274 = vtanh.f32 %v2197_v31  ;;  %v2100_v24 = vmax.f32 %v2086_v36, 0.0 }
 0x9a3   :  { %3276 = vtanh.f32 %v2192_v35  ;;  %v2485_v22 = vpop.f32.mrb[26].mxu0 }
 0x9a4   :  { %v2207_v32 = vadd.f32 %v2485_v22, %v2287_v8  ;;  %v2201_v44 = vpop.f32.mrb[27].mxu0  ;;  %2489 = vmatprep.mubr.f32.mxu1 %v2100_v24 }
 0x9a5   :  { %v2202_v34 = vadd.f32 %v2287_v8, %v2201_v44  ;;  %2490 = vmatmul.mubr.f32.gmra.mrb[26].mxu1 %v2101_v27 }
 0x9a6   :  { %3278 = vtanh.f32 %v2207_v32 }
 0x9a7   :  { %3280 = vtanh.f32 %v2202_v34  ;;  %v2488_v41 = vpop.f32.mrb[24].mxu1 }
 0x9a8   :  { %v2217_v15 = vadd.f32 %v2488_v41, %v2287_v8  ;;  %v2211_v42 = vpop.f32.mrb[25].mxu1 }
 0x9a9   :  { %v2212_v43 = vadd.f32 %v2287_v8, %v2211_v42 }
 0x9aa   :  { %3282 = vtanh.f32 %v2217_v15 }
 0x9ab   :  { %3284 = vtanh.f32 %v2212_v43 }
 0x9ac   :  { %v3275_v3 = vpop.eup %3274 }
 0x9ad   :  { %v3277_v25 = vpop.eup %3276  ;;  %2239 = vst [vmem:[%s4333_s12 + $0x8] sm:$0xff] %v3275_v3 }
 0x9ae   :  { %2238 = vst [vmem:[%s4333_s12] sm:$0xff] %v3277_v25 }
 0x9b0   :  { %v3279_v26 = vpop.eup %3278 }
 0x9b1   :  { %v3281_v47 = vpop.eup %3280  ;;  %2241 = vst [vmem:[%s4333_s12 + $0x18] sm:$0xff] %v3279_v26 }
 0x9b2   :  { %2240 = vst [vmem:[%s4333_s12 + $0x10] sm:$0xff] %v3281_v47 }
 0x9b4   :  { %v3283_v29 = vpop.eup %3282 }
 0x9b5   :  { %v3285_v33 = vpop.eup %3284  ;;  %2243 = vst [vmem:[%s4333_s12 + $0x28] sm:$0xff] %v3283_v29 }
 0x9b6   :  { %2242 = vst [vmem:[%s4333_s12 + $0x20] sm:$0xff] %v3285_v33 }
 0xa78   :  { %v2491_v38 = vpop.f32.mrb[26].mxu1 }
 0xa79   :  { %v2227_v39 = vadd.f32 %v2491_v38, %v2287_v8  ;;  %v2221_v45 = vpop.f32.mrb[27].mxu1 }
 0xa7a   :  { %v2222_v46 = vadd.f32 %v2287_v8, %v2221_v45 }
 0xa7b   :  { %3286 = vtanh.f32 %v2227_v39 }
 0xa7c   :  { %3288 = vtanh.f32 %v2222_v46 }
 0xa85   :  { %v3287_v53 = vpop.eup %3286 }
 0xa86   :  { %v3289_v54 = vpop.eup %3288  ;;  %2245 = vst [vmem:[%s4333_s12 + $0x38] sm:$0xff] %v3287_v53 }
 0xa87   :  { %2244 = vst [vmem:[%s4333_s12 + $0x30] sm:$0xff] %v3289_v54 }

</bundles_post_ra>
